<compile_context>
chip_gen: v7x
topology: tpu7x:2x2x1
jax: 0.10.0
libtpu: 0.0.40
codegen_flags: <defaults>
</compile_context>

<pallas_src>
import jax
import jax.numpy as jnp
from jax.experimental import pallas as pl
from jax.experimental.pallas import tpu as pltpu


# --------------------------------------------------------------------------
# In-kernel helpers
# --------------------------------------------------------------------------
def _shift_lanes(v, d):
    """Static lane shift of a [C, L] value: out[:, p] = v[:, p + d]
    (zero-filled where p + d is out of range).  d is a Python int."""
    if d == 0:
        return v
    c, l = v.shape
    fill = jnp.zeros((c, abs(d)), v.dtype)
    if d > 0:
        return jnp.concatenate([v[:, d:], fill], axis=1)
    return jnp.concatenate([fill, v[:, :l + d]], axis=1)


def _conv3x3(sources, w_ref):
    """3x3 conv as 9 lane-shifted MXU dots.

    sources: list of 9 (value [Cin, L] bf16, static lane shift) pairs, one per
    tap in (kh, kw) row-major order.  w_ref: [9, Cout, Cin] bf16.
    Returns [Cout, L] f32, exact at interior lanes of each image (the halo /
    tail lanes carry garbage that is masked or discarded later)."""
    acc = None
    for t, (src, d) in enumerate(sources):
        part = jnp.dot(w_ref[t], _shift_lanes(src, d),
                       preferred_element_type=jnp.float32)
        acc = part if acc is None else acc + part
    return acc


# --------------------------------------------------------------------------
# Fused block kernel factory
# --------------------------------------------------------------------------
def _make_block_kernel(*, B_tile, Wp, stride, use_se, inv_hw):
    """Fused ResnetBlock kernel for B_tile images per grid step.

    All activations are [channels, flat padded spatial] with the flat spatial
    axis (lanes) covering the zero-padded OUTPUT grid (Hp x Wp, lane-padded to
    a multiple of 128)."""
    # 3x3 tap lane-shift offsets on the padded output grid (row stride = Wp).
    tap_shift = [(kh - 1) * Wp + (kw - 1) for kh in range(3) for kw in range(3)]
    n_base = 8 if stride == 1 else 14

    def kernel(*refs):
        if stride == 1:
            (x_ref, w1_ref, s1_ref, b1_ref,
             w2_ref, s2_ref, b2_ref, mask_ref) = refs[:n_base]
        else:
            (q00_ref, q01_ref, q10_ref, q11_ref, w1_ref, s1_ref, b1_ref,
             w2_ref, s2_ref, b2_ref, wp_ref, sp_ref, bp_ref,
             mask_ref) = refs[:n_base]
        idx = n_base
        if use_se:
            sw1_ref, sb1_ref, sw2_ref, sb2_ref = refs[idx:idx + 4]
            idx += 4
        out_ref = refs[idx]

        mask = mask_ref[...]                     # [1, L]: 1 at valid pixels

        for b in range(B_tile):                  # static unroll over images
            # ---- conv1 (3x3, stride) + bn1 + relu, and the shortcut --------
            if stride == 1:
                xb = x_ref[b]                    # [Cin, L] f32 padded-flat
                xbb = xb.astype(jnp.bfloat16)
                srcs1 = [(xbb, tap_shift[t]) for t in range(9)]
                identity = xb                    # exact at interior lanes
            else:
                # 2x2 input phases, already embedded on the padded output grid
                q = [[q00_ref[b].astype(jnp.bfloat16),
                      q01_ref[b].astype(jnp.bfloat16)],
                     [q10_ref[b].astype(jnp.bfloat16),
                      q11_ref[b].astype(jnp.bfloat16)]]
                srcs1 = [(q[kh % 2][kw % 2], (kh // 2) * Wp + (kw // 2))
                         for kh in range(3) for kw in range(3)]
                # 1x1 stride-2 projection + BN: zero-shift tap of odd/odd phase
                identity = (jnp.dot(wp_ref[...], q[1][1],
                                    preferred_element_type=jnp.float32)
                            * sp_ref[...] + bp_ref[...])
            acc1 = _conv3x3(srcs1, w1_ref)                       # [Cout, L]
            # mask zeroes the halo ring so f1 acts as a zero-padded map for
            # conv2 (replaces the old scratch-zero + misaligned interior write)
            f1 = jnp.maximum(acc1 * s1_ref[...] + b1_ref[...], 0.0) * mask

            # ---- conv2 (3x3, stride 1) + bn2 -------------------------------
            f1b = f1.astype(jnp.bfloat16)
            srcs2 = [(f1b, tap_shift[t]) for t in range(9)]
            f2 = _conv3x3(srcs2, w2_ref) * s2_ref[...] + b2_ref[...]

            # ---- squeeze-excite (tiny; pure VPU/XLU/EUP, stays f32) --------
            if use_se:
                pooled = jnp.sum(f2 * mask, axis=1, keepdims=True) * inv_hw
                z = jnp.maximum(
                    jnp.sum(sw1_ref[...] * pooled, axis=0, keepdims=True)
                    + sb1_ref[...], 0.0)                          # [1, Cs]
                gate = jax.nn.sigmoid(
                    jnp.sum(sw2_ref[...] * z, axis=1, keepdims=True)
                    + sb2_ref[...])                               # [Cout, 1]
                f2 = f2 * gate

            # ---- residual add + relu, lane-dense [Cout, L] store -----------
            out_ref[b] = jnp.maximum(f2 + identity, 0.0).astype(out_ref.dtype)

    return kernel


# --------------------------------------------------------------------------
# pallas_call glue
# --------------------------------------------------------------------------
def _pick_batch_tile(n):
    """Fold several images per grid step to amortize per-step overhead, while
    keeping >= 2 grid steps (megacore) when the batch allows it."""
    bt = 1
    for cand in (8, 4, 2):
        if n % cand == 0:
            bt = cand
            break
    if n // bt == 1 and bt >= 4 and n >= 4:
        bt //= 2
    return bt


def _full_spec(shape):
    if len(shape) == 2:
        return pl.BlockSpec(shape, lambda n: (0, 0))
    return pl.BlockSpec(shape, lambda n: (0, 0, 0))


def _batch_spec(b_tile, trailing):
    return pl.BlockSpec((b_tile,) + tuple(trailing), lambda n: (n, 0, 0))


# --------------------------------------------------------------------------
# ResnetBlock module (deterministic synthetic parameters)
# --------------------------------------------------------------------------
class ResnetBlockPallas:
    """Pallas-TPU forward for imagenette ResnetBlock (eval-mode BN folded)."""

    def __init__(self, key, in_channels, out_channels, SE=False,
                 se_squeeze_ratio=4):
        self.in_channels = in_channels
        self.out_channels = out_channels
        self.use_se = SE
        self.stride = 1 if in_channels == out_channels else 2
        keys = jax.random.split(key, 10)
        bf16 = jnp.bfloat16

        def conv_w(k, kh, kw, ci, co):
            return (jax.random.normal(k, (kh, kw, ci, co), jnp.float32)
                    / jnp.sqrt(float(kh * kw * ci)))

        def bn_fold(k, c, eps=1e-5):
            kg, kb, km, kv = jax.random.split(k, 4)
            gamma = 1.0 + 0.1 * jax.random.normal(kg, (c, 1), jnp.float32)
            beta = 0.1 * jax.random.normal(kb, (c, 1), jnp.float32)
            mean = 0.1 * jax.random.normal(km, (c, 1), jnp.float32)
            var = 1.0 + jax.random.uniform(kv, (c, 1), jnp.float32)
            scale = gamma / jnp.sqrt(var + eps)
            bias = beta - mean * scale
            return scale, bias

        ci, co = in_channels, out_channels
        # conv1 (3x3, stride=self.stride) + bn1
        self.w1 = conv_w(keys[0], 3, 3, ci, co)
        self.s1, self.b1 = bn_fold(keys[1], co)
        # conv2 (3x3, stride 1) + bn2
        self.w2 = conv_w(keys[2], 3, 3, co, co)
        self.s2, self.b2 = bn_fold(keys[3], co)
        # per-tap transposed bf16 copies for the MXU: [9, Cout, Cin]
        self.w1t = jnp.transpose(self.w1, (0, 1, 3, 2)).reshape(9, co, ci).astype(bf16)
        self.w2t = jnp.transpose(self.w2, (0, 1, 3, 2)).reshape(9, co, co).astype(bf16)
        # 1x1 stride-2 projection + bn when channels change
        if self.stride == 2:
            self.wp = conv_w(keys[4], 1, 1, ci, co)
            self.sp, self.bp = bn_fold(keys[5], co)
            self.wpt = self.wp.reshape(ci, co).T.astype(bf16)     # [co, ci]
        # squeeze-excite (kept in f32, kernel-friendly shapes)
        if SE:
            cs = co // se_squeeze_ratio
            self.se_w1 = (jax.random.normal(keys[6], (co, cs), jnp.float32)
                          / jnp.sqrt(float(co)))
            self.se_b1 = 0.1 * jax.random.normal(keys[7], (1, cs), jnp.float32)
            self.se_w2 = (jax.random.normal(keys[8], (cs, co), jnp.float32)
                          / jnp.sqrt(float(cs)))
            self.se_b2 = 0.1 * jax.random.normal(keys[9], (co, 1), jnp.float32)
            self.se_w2t = self.se_w2.T                            # [co, cs]

    # ------------------------------------------------------------------
    def __call__(self, x_nchw):
        x = x_nchw.astype(jnp.float32)                   # NCHW end to end
        N, ci, H, W = x.shape
        co = self.out_channels
        if self.stride == 1:
            Ho, Wo = H, W
        else:
            assert H % 2 == 0 and W % 2 == 0, "even spatial dims expected"
            Ho, Wo = H // 2, W // 2
        Hp, Wp = Ho + 2, Wo + 2                          # padded OUTPUT grid
        S = Hp * Wp
        S_pad = ((S + 127) // 128) * 128                 # lane-dense width
        b_tile = _pick_batch_tile(N)

        def flat_pad(a):                                 # [N,C,Hp,Wp] -> [N,C,S_pad]
            a = a.reshape(N, a.shape[1], S)
            return jnp.pad(a, ((0, 0), (0, 0), (0, S_pad - S)))

        # interior-lane selector: 1 at valid output pixels, 0 on halo / tail
        mask = jnp.pad(jnp.ones((Ho, Wo), jnp.float32), ((1, 1), (1, 1)))
        mask = jnp.pad(mask.reshape(1, S), ((0, 0), (0, S_pad - S)))

        xp = jnp.pad(x, ((0, 0), (0, 0), (1, 1), (1, 1)))        # halo pad = 1

        if self.stride == 1:
            args = [flat_pad(xp), self.w1t, self.s1, self.b1,
                    self.w2t, self.s2, self.b2, mask]
            in_specs = [
                _batch_spec(b_tile, (ci, S_pad)),
                _full_spec((9, co, ci)),
                _full_spec((co, 1)), _full_spec((co, 1)),
                _full_spec((9, co, co)),
                _full_spec((co, 1)), _full_spec((co, 1)),
                _full_spec((1, S_pad)),
            ]
        else:
            # 2x2 phase split of the padded input, each phase re-embedded on
            # the padded output grid so stride-2 taps are plain lane shifts.
            qs = []
            for r in (0, 1):
                for c in (0, 1):
                    ph = xp[:, :, r::2, c::2]            # [N, ci, Ho+1, Wo+1]
                    ph = jnp.pad(ph, ((0, 0), (0, 0), (1, 0), (1, 0)))
                    qs.append(flat_pad(ph))
            args = qs + [self.w1t, self.s1, self.b1, self.w2t, self.s2,
                         self.b2, self.wpt, self.sp, self.bp, mask]
            in_specs = ([_batch_spec(b_tile, (ci, S_pad))] * 4 + [
                _full_spec((9, co, ci)),
                _full_spec((co, 1)), _full_spec((co, 1)),
                _full_spec((9, co, co)),
                _full_spec((co, 1)), _full_spec((co, 1)),
                _full_spec((co, ci)),
                _full_spec((co, 1)), _full_spec((co, 1)),
                _full_spec((1, S_pad)),
            ])

        if self.use_se:
            cs = self.se_w1.shape[1]
            args += [self.se_w1, self.se_b1, self.se_w2t, self.se_b2]
            in_specs += [_full_spec((co, cs)), _full_spec((1, cs)),
                         _full_spec((co, cs)), _full_spec((co, 1))]

        kernel = _make_block_kernel(B_tile=b_tile, Wp=Wp, stride=self.stride,
                                    use_se=self.use_se,
                                    inv_hw=1.0 / float(Ho * Wo))

        # Advisory cost estimate so XLA can schedule the wrapper pads/slices
        # around the kernel.
        flops = 2 * N * Ho * Wo * 9 * (ci * co + co * co)
        if self.stride == 2:
            flops += 2 * N * Ho * Wo * ci * co
        if self.use_se:
            flops += 4 * N * co * self.se_w1.shape[1]
        bytes_accessed = (N * co * S_pad * 4
                          + sum(int(a.size) * a.dtype.itemsize for a in args))
        cost = pl.CostEstimate(
            flops=int(flops),
            transcendentals=int(N * co) if self.use_se else 0,
            bytes_accessed=int(bytes_accessed))

        out_flat = pl.pallas_call(
            kernel,
            out_shape=jax.ShapeDtypeStruct((N, co, S_pad), jnp.float32),
            grid_spec=pltpu.PrefetchScalarGridSpec(
                num_scalar_prefetch=0,
                grid=(N // b_tile,),
                in_specs=in_specs,
                out_specs=_batch_spec(b_tile, (co, S_pad)),
            ),
            compiler_params=pltpu.CompilerParams(
                dimension_semantics=("parallel",),
                vmem_limit_bytes=32 * 1024 * 1024),
            cost_estimate=cost,
        )(*args)

        # drop halo ring + lane padding -> NCHW (no transpose needed)
        out = out_flat[:, :, :S].reshape(N, co, Hp, Wp)[:, :, 1:Ho + 1, 1:Wo + 1]
        return out

    # ------------------------------------------------------------------
    # Pure-JAX reference with identical (eval-mode BN, bf16-product /
    # f32-accumulate MXU) semantics.
    def reference(self, x_nchw):
        bf16, f32 = jnp.bfloat16, jnp.float32
        x = jnp.transpose(x_nchw, (0, 2, 3, 1)).astype(f32)       # NHWC

        def cbn(inp, w, s, b, stride, relu):
            p = w.shape[0] // 2
            y = jax.lax.conv_general_dilated(
                inp.astype(bf16), w.astype(bf16),
                window_strides=(stride, stride),
                padding=((p, p), (p, p)),
                dimension_numbers=("NHWC", "HWIO", "NHWC"),
                preferred_element_type=f32)
            y = y * s.reshape(1, 1, 1, -1) + b.reshape(1, 1, 1, -1)
            return jnp.maximum(y, 0.0) if relu else y

        f = cbn(x, self.w1, self.s1, self.b1, self.stride, True)
        f = cbn(f, self.w2, self.s2, self.b2, 1, False)
        identity = (cbn(x, self.wp, self.sp, self.bp, 2, False)
                    if self.stride == 2 else x)
        if self.use_se:
            se = jnp.mean(f, axis=(1, 2))                         # [N, co] f32
            z = jnp.maximum(
                jnp.dot(se, self.se_w1,
                        precision=jax.lax.Precision.HIGHEST) + self.se_b1, 0.0)
            gate = jax.nn.sigmoid(
                jnp.dot(z, self.se_w2, precision=jax.lax.Precision.HIGHEST)
                + self.se_b2.reshape(1, -1))
            f = f * gate[:, None, None, :]
        out = jnp.maximum(f + identity, 0.0)
        return jnp.transpose(out, (0, 3, 1, 2))


# --------------------------------------------------------------------------
if __name__ == "__main__":
    key = jax.random.PRNGKey(0)
    kx, kb1, kb2 = jax.random.split(key, 3)
    x = jax.random.normal(kx, (2, 4, 16, 16), jnp.float32)   # NCHW, PyTorch-ish

    # Kernel and reference use identical bf16 products with f32 accumulation;
    # the tolerance covers f32 summation-order differences only.
    TOL = 1e-2

    # Case 1: in == out -> identity shortcut, stride 1, no SE.
    blk1 = ResnetBlockPallas(kb1, in_channels=4, out_channels=4, SE=False)
    y1 = jax.block_until_ready(blk1(x))
    assert y1.shape == (2, 4, 16, 16)
    ref1 = blk1.reference(x)
    assert jnp.allclose(y1, ref1, atol=TOL, rtol=TOL), \
        float(jnp.max(jnp.abs(y1 - ref1)))

    # Case 2: channel change -> stride-2 conv1 + fused 1x1 projection, with SE.
    blk2 = ResnetBlockPallas(kb2, in_channels=4, out_channels=8, SE=True)
    y2 = jax.block_until_ready(blk2(x))
    assert y2.shape == (2, 8, 8, 8)
    ref2 = blk2.reference(x)
    assert jnp.allclose(y2, ref2, atol=TOL, rtol=TOL), \
        float(jnp.max(jnp.abs(y2 - ref2)))

    print("KERNEL_OK")
</pallas_src>

<mosaic_0001>
module attributes {stable_mosaic.version = 11 : i64} {
  func.func @kernel(%arg0: i32, %arg1: memref<2x4x384xf32, #tpu.memory_space<vmem>>, %arg2: memref<9x4x4xbf16, #tpu.memory_space<vmem>>, %arg3: memref<4x1xf32, #tpu.memory_space<vmem>>, %arg4: memref<4x1xf32, #tpu.memory_space<vmem>>, %arg5: memref<9x4x4xbf16, #tpu.memory_space<vmem>>, %arg6: memref<4x1xf32, #tpu.memory_space<vmem>>, %arg7: memref<4x1xf32, #tpu.memory_space<vmem>>, %arg8: memref<1x384xf32, #tpu.memory_space<vmem>>, %arg9: memref<2x4x384xf32, #tpu.memory_space<vmem>>) attributes {dimension_semantics = [#tpu.dimension_semantics<parallel>], iteration_bounds = array<i64: 1>, scalar_prefetch = 0 : i64, scratch_operands = 0 : i64, tpu.core_type = #tpu.core_type<tc>, window_params = [{transform_indices = @transform_0, window_bounds = array<i64: 2, 4, 384>}, {pipeline_mode = #tpu.pipeline_mode<synchronous>, transform_indices = @transform_1, window_bounds = array<i64: 9, 4, 4>}, {pipeline_mode = #tpu.pipeline_mode<synchronous>, transform_indices = @transform_2, window_bounds = array<i64: 4, 1>}, {pipeline_mode = #tpu.pipeline_mode<synchronous>, transform_indices = @transform_3, window_bounds = array<i64: 4, 1>}, {pipeline_mode = #tpu.pipeline_mode<synchronous>, transform_indices = @transform_4, window_bounds = array<i64: 9, 4, 4>}, {pipeline_mode = #tpu.pipeline_mode<synchronous>, transform_indices = @transform_5, window_bounds = array<i64: 4, 1>}, {pipeline_mode = #tpu.pipeline_mode<synchronous>, transform_indices = @transform_6, window_bounds = array<i64: 4, 1>}, {pipeline_mode = #tpu.pipeline_mode<synchronous>, transform_indices = @transform_7, window_bounds = array<i64: 1, 384>}, {transform_indices = @transform_8, window_bounds = array<i64: 2, 4, 384>}]} {
    %c0 = arith.constant 0 : index
    %c0_0 = arith.constant 0 : index
    %0 = vector.load %arg8[%c0, %c0_0] : memref<1x384xf32, #tpu.memory_space<vmem>>, vector<1x384xf32>
    %c0_1 = arith.constant 0 : index
    %c0_2 = arith.constant 0 : index
    %c0_3 = arith.constant 0 : index
    %1 = vector.load %arg1[%c0_1, %c0_2, %c0_3] : memref<2x4x384xf32, #tpu.memory_space<vmem>>, vector<1x4x384xf32>
    %2 = vector.shape_cast %1 : vector<1x4x384xf32> to vector<4x384xf32>
    %3 = arith.truncf %2 : vector<4x384xf32> to vector<4x384xbf16>
    %c0_4 = arith.constant 0 : index
    %c0_5 = arith.constant 0 : index
    %c0_6 = arith.constant 0 : index
    %4 = vector.load %arg2[%c0_4, %c0_5, %c0_6] : memref<9x4x4xbf16, #tpu.memory_space<vmem>>, vector<1x4x4xbf16>
    %5 = vector.shape_cast %4 : vector<1x4x4xbf16> to vector<4x4xbf16>
    %cst = arith.constant 0.000000e+00 : bf16
    %6 = vector.broadcast %cst : bf16 to vector<4x19xbf16>
    %7 = vector.extract_strided_slice %3 {offsets = [0, 0], sizes = [4, 365], strides = [1, 1]} : vector<4x384xbf16> to vector<4x365xbf16>
    %8 = tpu.concatenate %6, %7 in 1 : vector<4x19xbf16>, vector<4x365xbf16> -> vector<4x384xbf16>
    %cst_7 = arith.constant dense<0.000000e+00> : vector<4x384xf32>
    %9 = tpu.matmul %5, %8, %cst_7 {dimension_numbers = #tpu.dot_dimension_numbers<[1], [0], [0], [1], [0, 0, 1, 1], [], []>} : vector<4x4xbf16>, vector<4x384xbf16>, vector<4x384xf32> -> vector<4x384xf32>
    %c1 = arith.constant 1 : index
    %c0_8 = arith.constant 0 : index
    %c0_9 = arith.constant 0 : index
    %10 = vector.load %arg2[%c1, %c0_8, %c0_9] : memref<9x4x4xbf16, #tpu.memory_space<vmem>>, vector<1x4x4xbf16>
    %11 = vector.shape_cast %10 : vector<1x4x4xbf16> to vector<4x4xbf16>
    %cst_10 = arith.constant 0.000000e+00 : bf16
    %12 = vector.broadcast %cst_10 : bf16 to vector<4x18xbf16>
    %13 = vector.extract_strided_slice %3 {offsets = [0, 0], sizes = [4, 366], strides = [1, 1]} : vector<4x384xbf16> to vector<4x366xbf16>
    %14 = tpu.concatenate %12, %13 in 1 : vector<4x18xbf16>, vector<4x366xbf16> -> vector<4x384xbf16>
    %cst_11 = arith.constant dense<0.000000e+00> : vector<4x384xf32>
    %15 = tpu.matmul %11, %14, %cst_11 {dimension_numbers = #tpu.dot_dimension_numbers<[1], [0], [0], [1], [0, 0, 1, 1], [], []>} : vector<4x4xbf16>, vector<4x384xbf16>, vector<4x384xf32> -> vector<4x384xf32>
    %16 = arith.addf %9, %15 : vector<4x384xf32>
    %c2 = arith.constant 2 : index
    %c0_12 = arith.constant 0 : index
    %c0_13 = arith.constant 0 : index
    %17 = vector.load %arg2[%c2, %c0_12, %c0_13] : memref<9x4x4xbf16, #tpu.memory_space<vmem>>, vector<1x4x4xbf16>
    %18 = vector.shape_cast %17 : vector<1x4x4xbf16> to vector<4x4xbf16>
    %cst_14 = arith.constant 0.000000e+00 : bf16
    %19 = vector.broadcast %cst_14 : bf16 to vector<4x17xbf16>
    %20 = vector.extract_strided_slice %3 {offsets = [0, 0], sizes = [4, 367], strides = [1, 1]} : vector<4x384xbf16> to vector<4x367xbf16>
    %21 = tpu.concatenate %19, %20 in 1 : vector<4x17xbf16>, vector<4x367xbf16> -> vector<4x384xbf16>
    %cst_15 = arith.constant dense<0.000000e+00> : vector<4x384xf32>
    %22 = tpu.matmul %18, %21, %cst_15 {dimension_numbers = #tpu.dot_dimension_numbers<[1], [0], [0], [1], [0, 0, 1, 1], [], []>} : vector<4x4xbf16>, vector<4x384xbf16>, vector<4x384xf32> -> vector<4x384xf32>
    %23 = arith.addf %16, %22 : vector<4x384xf32>
    %c3 = arith.constant 3 : index
    %c0_16 = arith.constant 0 : index
    %c0_17 = arith.constant 0 : index
    %24 = vector.load %arg2[%c3, %c0_16, %c0_17] : memref<9x4x4xbf16, #tpu.memory_space<vmem>>, vector<1x4x4xbf16>
    %25 = vector.shape_cast %24 : vector<1x4x4xbf16> to vector<4x4xbf16>
    %cst_18 = arith.constant 0.000000e+00 : bf16
    %26 = vector.broadcast %cst_18 : bf16 to vector<4x1xbf16>
    %27 = vector.extract_strided_slice %3 {offsets = [0, 0], sizes = [4, 383], strides = [1, 1]} : vector<4x384xbf16> to vector<4x383xbf16>
    %28 = tpu.concatenate %26, %27 in 1 : vector<4x1xbf16>, vector<4x383xbf16> -> vector<4x384xbf16>
    %cst_19 = arith.constant dense<0.000000e+00> : vector<4x384xf32>
    %29 = tpu.matmul %25, %28, %cst_19 {dimension_numbers = #tpu.dot_dimension_numbers<[1], [0], [0], [1], [0, 0, 1, 1], [], []>} : vector<4x4xbf16>, vector<4x384xbf16>, vector<4x384xf32> -> vector<4x384xf32>
    %30 = arith.addf %23, %29 : vector<4x384xf32>
    %c4 = arith.constant 4 : index
    %c0_20 = arith.constant 0 : index
    %c0_21 = arith.constant 0 : index
    %31 = vector.load %arg2[%c4, %c0_20, %c0_21] : memref<9x4x4xbf16, #tpu.memory_space<vmem>>, vector<1x4x4xbf16>
    %32 = vector.shape_cast %31 : vector<1x4x4xbf16> to vector<4x4xbf16>
    %cst_22 = arith.constant dense<0.000000e+00> : vector<4x384xf32>
    %33 = tpu.matmul %32, %3, %cst_22 {dimension_numbers = #tpu.dot_dimension_numbers<[1], [0], [0], [1], [0, 0, 1, 1], [], []>} : vector<4x4xbf16>, vector<4x384xbf16>, vector<4x384xf32> -> vector<4x384xf32>
    %34 = arith.addf %30, %33 : vector<4x384xf32>
    %c5 = arith.constant 5 : index
    %c0_23 = arith.constant 0 : index
    %c0_24 = arith.constant 0 : index
    %35 = vector.load %arg2[%c5, %c0_23, %c0_24] : memref<9x4x4xbf16, #tpu.memory_space<vmem>>, vector<1x4x4xbf16>
    %36 = vector.shape_cast %35 : vector<1x4x4xbf16> to vector<4x4xbf16>
    %cst_25 = arith.constant 0.000000e+00 : bf16
    %37 = vector.broadcast %cst_25 : bf16 to vector<4x1xbf16>
    %38 = vector.extract_strided_slice %3 {offsets = [0, 1], sizes = [4, 383], strides = [1, 1]} : vector<4x384xbf16> to vector<4x383xbf16>
    %39 = tpu.concatenate %38, %37 in 1 : vector<4x383xbf16>, vector<4x1xbf16> -> vector<4x384xbf16>
    %cst_26 = arith.constant dense<0.000000e+00> : vector<4x384xf32>
    %40 = tpu.matmul %36, %39, %cst_26 {dimension_numbers = #tpu.dot_dimension_numbers<[1], [0], [0], [1], [0, 0, 1, 1], [], []>} : vector<4x4xbf16>, vector<4x384xbf16>, vector<4x384xf32> -> vector<4x384xf32>
    %41 = arith.addf %34, %40 : vector<4x384xf32>
    %c6 = arith.constant 6 : index
    %c0_27 = arith.constant 0 : index
    %c0_28 = arith.constant 0 : index
    %42 = vector.load %arg2[%c6, %c0_27, %c0_28] : memref<9x4x4xbf16, #tpu.memory_space<vmem>>, vector<1x4x4xbf16>
    %43 = vector.shape_cast %42 : vector<1x4x4xbf16> to vector<4x4xbf16>
    %cst_29 = arith.constant 0.000000e+00 : bf16
    %44 = vector.broadcast %cst_29 : bf16 to vector<4x17xbf16>
    %45 = vector.extract_strided_slice %3 {offsets = [0, 17], sizes = [4, 367], strides = [1, 1]} : vector<4x384xbf16> to vector<4x367xbf16>
    %46 = tpu.concatenate %45, %44 in 1 : vector<4x367xbf16>, vector<4x17xbf16> -> vector<4x384xbf16>
    %cst_30 = arith.constant dense<0.000000e+00> : vector<4x384xf32>
    %47 = tpu.matmul %43, %46, %cst_30 {dimension_numbers = #tpu.dot_dimension_numbers<[1], [0], [0], [1], [0, 0, 1, 1], [], []>} : vector<4x4xbf16>, vector<4x384xbf16>, vector<4x384xf32> -> vector<4x384xf32>
    %48 = arith.addf %41, %47 : vector<4x384xf32>
    %c7 = arith.constant 7 : index
    %c0_31 = arith.constant 0 : index
    %c0_32 = arith.constant 0 : index
    %49 = vector.load %arg2[%c7, %c0_31, %c0_32] : memref<9x4x4xbf16, #tpu.memory_space<vmem>>, vector<1x4x4xbf16>
    %50 = vector.shape_cast %49 : vector<1x4x4xbf16> to vector<4x4xbf16>
    %cst_33 = arith.constant 0.000000e+00 : bf16
    %51 = vector.broadcast %cst_33 : bf16 to vector<4x18xbf16>
    %52 = vector.extract_strided_slice %3 {offsets = [0, 18], sizes = [4, 366], strides = [1, 1]} : vector<4x384xbf16> to vector<4x366xbf16>
    %53 = tpu.concatenate %52, %51 in 1 : vector<4x366xbf16>, vector<4x18xbf16> -> vector<4x384xbf16>
    %cst_34 = arith.constant dense<0.000000e+00> : vector<4x384xf32>
    %54 = tpu.matmul %50, %53, %cst_34 {dimension_numbers = #tpu.dot_dimension_numbers<[1], [0], [0], [1], [0, 0, 1, 1], [], []>} : vector<4x4xbf16>, vector<4x384xbf16>, vector<4x384xf32> -> vector<4x384xf32>
    %55 = arith.addf %48, %54 : vector<4x384xf32>
    %c8 = arith.constant 8 : index
    %c0_35 = arith.constant 0 : index
    %c0_36 = arith.constant 0 : index
    %56 = vector.load %arg2[%c8, %c0_35, %c0_36] : memref<9x4x4xbf16, #tpu.memory_space<vmem>>, vector<1x4x4xbf16>
    %57 = vector.shape_cast %56 : vector<1x4x4xbf16> to vector<4x4xbf16>
    %cst_37 = arith.constant 0.000000e+00 : bf16
    %58 = vector.broadcast %cst_37 : bf16 to vector<4x19xbf16>
    %59 = vector.extract_strided_slice %3 {offsets = [0, 19], sizes = [4, 365], strides = [1, 1]} : vector<4x384xbf16> to vector<4x365xbf16>
    %60 = tpu.concatenate %59, %58 in 1 : vector<4x365xbf16>, vector<4x19xbf16> -> vector<4x384xbf16>
    %cst_38 = arith.constant dense<0.000000e+00> : vector<4x384xf32>
    %61 = tpu.matmul %57, %60, %cst_38 {dimension_numbers = #tpu.dot_dimension_numbers<[1], [0], [0], [1], [0, 0, 1, 1], [], []>} : vector<4x4xbf16>, vector<4x384xbf16>, vector<4x384xf32> -> vector<4x384xf32>
    %62 = arith.addf %55, %61 : vector<4x384xf32>
    %c0_39 = arith.constant 0 : index
    %c0_40 = arith.constant 0 : index
    %63 = vector.load %arg3[%c0_39, %c0_40] : memref<4x1xf32, #tpu.memory_space<vmem>>, vector<4x1xf32>
    %64 = vector.broadcast %63 : vector<4x1xf32> to vector<4x384xf32>
    %65 = arith.mulf %62, %64 : vector<4x384xf32>
    %c0_41 = arith.constant 0 : index
    %c0_42 = arith.constant 0 : index
    %66 = vector.load %arg4[%c0_41, %c0_42] : memref<4x1xf32, #tpu.memory_space<vmem>>, vector<4x1xf32>
    %67 = vector.broadcast %66 : vector<4x1xf32> to vector<4x384xf32>
    %68 = arith.addf %65, %67 : vector<4x384xf32>
    %cst_43 = arith.constant 0.000000e+00 : f32
    %69 = vector.broadcast %cst_43 : f32 to vector<4x384xf32>
    %70 = arith.maximumf %68, %69 : vector<4x384xf32>
    %71 = vector.broadcast %0 : vector<1x384xf32> to vector<4x384xf32>
    %72 = arith.mulf %70, %71 : vector<4x384xf32>
    %73 = arith.truncf %72 : vector<4x384xf32> to vector<4x384xbf16>
    %c0_44 = arith.constant 0 : index
    %c0_45 = arith.constant 0 : index
    %c0_46 = arith.constant 0 : index
    %74 = vector.load %arg5[%c0_44, %c0_45, %c0_46] : memref<9x4x4xbf16, #tpu.memory_space<vmem>>, vector<1x4x4xbf16>
    %75 = vector.shape_cast %74 : vector<1x4x4xbf16> to vector<4x4xbf16>
    %cst_47 = arith.constant 0.000000e+00 : bf16
    %76 = vector.broadcast %cst_47 : bf16 to vector<4x19xbf16>
    %77 = vector.extract_strided_slice %73 {offsets = [0, 0], sizes = [4, 365], strides = [1, 1]} : vector<4x384xbf16> to vector<4x365xbf16>
    %78 = tpu.concatenate %76, %77 in 1 : vector<4x19xbf16>, vector<4x365xbf16> -> vector<4x384xbf16>
    %cst_48 = arith.constant dense<0.000000e+00> : vector<4x384xf32>
    %79 = tpu.matmul %75, %78, %cst_48 {dimension_numbers = #tpu.dot_dimension_numbers<[1], [0], [0], [1], [0, 0, 1, 1], [], []>} : vector<4x4xbf16>, vector<4x384xbf16>, vector<4x384xf32> -> vector<4x384xf32>
    %c1_49 = arith.constant 1 : index
    %c0_50 = arith.constant 0 : index
    %c0_51 = arith.constant 0 : index
    %80 = vector.load %arg5[%c1_49, %c0_50, %c0_51] : memref<9x4x4xbf16, #tpu.memory_space<vmem>>, vector<1x4x4xbf16>
    %81 = vector.shape_cast %80 : vector<1x4x4xbf16> to vector<4x4xbf16>
    %cst_52 = arith.constant 0.000000e+00 : bf16
    %82 = vector.broadcast %cst_52 : bf16 to vector<4x18xbf16>
    %83 = vector.extract_strided_slice %73 {offsets = [0, 0], sizes = [4, 366], strides = [1, 1]} : vector<4x384xbf16> to vector<4x366xbf16>
    %84 = tpu.concatenate %82, %83 in 1 : vector<4x18xbf16>, vector<4x366xbf16> -> vector<4x384xbf16>
    %cst_53 = arith.constant dense<0.000000e+00> : vector<4x384xf32>
    %85 = tpu.matmul %81, %84, %cst_53 {dimension_numbers = #tpu.dot_dimension_numbers<[1], [0], [0], [1], [0, 0, 1, 1], [], []>} : vector<4x4xbf16>, vector<4x384xbf16>, vector<4x384xf32> -> vector<4x384xf32>
    %86 = arith.addf %79, %85 : vector<4x384xf32>
    %c2_54 = arith.constant 2 : index
    %c0_55 = arith.constant 0 : index
    %c0_56 = arith.constant 0 : index
    %87 = vector.load %arg5[%c2_54, %c0_55, %c0_56] : memref<9x4x4xbf16, #tpu.memory_space<vmem>>, vector<1x4x4xbf16>
    %88 = vector.shape_cast %87 : vector<1x4x4xbf16> to vector<4x4xbf16>
    %cst_57 = arith.constant 0.000000e+00 : bf16
    %89 = vector.broadcast %cst_57 : bf16 to vector<4x17xbf16>
    %90 = vector.extract_strided_slice %73 {offsets = [0, 0], sizes = [4, 367], strides = [1, 1]} : vector<4x384xbf16> to vector<4x367xbf16>
    %91 = tpu.concatenate %89, %90 in 1 : vector<4x17xbf16>, vector<4x367xbf16> -> vector<4x384xbf16>
    %cst_58 = arith.constant dense<0.000000e+00> : vector<4x384xf32>
    %92 = tpu.matmul %88, %91, %cst_58 {dimension_numbers = #tpu.dot_dimension_numbers<[1], [0], [0], [1], [0, 0, 1, 1], [], []>} : vector<4x4xbf16>, vector<4x384xbf16>, vector<4x384xf32> -> vector<4x384xf32>
    %93 = arith.addf %86, %92 : vector<4x384xf32>
    %c3_59 = arith.constant 3 : index
    %c0_60 = arith.constant 0 : index
    %c0_61 = arith.constant 0 : index
    %94 = vector.load %arg5[%c3_59, %c0_60, %c0_61] : memref<9x4x4xbf16, #tpu.memory_space<vmem>>, vector<1x4x4xbf16>
    %95 = vector.shape_cast %94 : vector<1x4x4xbf16> to vector<4x4xbf16>
    %cst_62 = arith.constant 0.000000e+00 : bf16
    %96 = vector.broadcast %cst_62 : bf16 to vector<4x1xbf16>
    %97 = vector.extract_strided_slice %73 {offsets = [0, 0], sizes = [4, 383], strides = [1, 1]} : vector<4x384xbf16> to vector<4x383xbf16>
    %98 = tpu.concatenate %96, %97 in 1 : vector<4x1xbf16>, vector<4x383xbf16> -> vector<4x384xbf16>
    %cst_63 = arith.constant dense<0.000000e+00> : vector<4x384xf32>
    %99 = tpu.matmul %95, %98, %cst_63 {dimension_numbers = #tpu.dot_dimension_numbers<[1], [0], [0], [1], [0, 0, 1, 1], [], []>} : vector<4x4xbf16>, vector<4x384xbf16>, vector<4x384xf32> -> vector<4x384xf32>
    %100 = arith.addf %93, %99 : vector<4x384xf32>
    %c4_64 = arith.constant 4 : index
    %c0_65 = arith.constant 0 : index
    %c0_66 = arith.constant 0 : index
    %101 = vector.load %arg5[%c4_64, %c0_65, %c0_66] : memref<9x4x4xbf16, #tpu.memory_space<vmem>>, vector<1x4x4xbf16>
    %102 = vector.shape_cast %101 : vector<1x4x4xbf16> to vector<4x4xbf16>
    %cst_67 = arith.constant dense<0.000000e+00> : vector<4x384xf32>
    %103 = tpu.matmul %102, %73, %cst_67 {dimension_numbers = #tpu.dot_dimension_numbers<[1], [0], [0], [1], [0, 0, 1, 1], [], []>} : vector<4x4xbf16>, vector<4x384xbf16>, vector<4x384xf32> -> vector<4x384xf32>
    %104 = arith.addf %100, %103 : vector<4x384xf32>
    %c5_68 = arith.constant 5 : index
    %c0_69 = arith.constant 0 : index
    %c0_70 = arith.constant 0 : index
    %105 = vector.load %arg5[%c5_68, %c0_69, %c0_70] : memref<9x4x4xbf16, #tpu.memory_space<vmem>>, vector<1x4x4xbf16>
    %106 = vector.shape_cast %105 : vector<1x4x4xbf16> to vector<4x4xbf16>
    %cst_71 = arith.constant 0.000000e+00 : bf16
    %107 = vector.broadcast %cst_71 : bf16 to vector<4x1xbf16>
    %108 = vector.extract_strided_slice %73 {offsets = [0, 1], sizes = [4, 383], strides = [1, 1]} : vector<4x384xbf16> to vector<4x383xbf16>
    %109 = tpu.concatenate %108, %107 in 1 : vector<4x383xbf16>, vector<4x1xbf16> -> vector<4x384xbf16>
    %cst_72 = arith.constant dense<0.000000e+00> : vector<4x384xf32>
    %110 = tpu.matmul %106, %109, %cst_72 {dimension_numbers = #tpu.dot_dimension_numbers<[1], [0], [0], [1], [0, 0, 1, 1], [], []>} : vector<4x4xbf16>, vector<4x384xbf16>, vector<4x384xf32> -> vector<4x384xf32>
    %111 = arith.addf %104, %110 : vector<4x384xf32>
    %c6_73 = arith.constant 6 : index
    %c0_74 = arith.constant 0 : index
    %c0_75 = arith.constant 0 : index
    %112 = vector.load %arg5[%c6_73, %c0_74, %c0_75] : memref<9x4x4xbf16, #tpu.memory_space<vmem>>, vector<1x4x4xbf16>
    %113 = vector.shape_cast %112 : vector<1x4x4xbf16> to vector<4x4xbf16>
    %cst_76 = arith.constant 0.000000e+00 : bf16
    %114 = vector.broadcast %cst_76 : bf16 to vector<4x17xbf16>
    %115 = vector.extract_strided_slice %73 {offsets = [0, 17], sizes = [4, 367], strides = [1, 1]} : vector<4x384xbf16> to vector<4x367xbf16>
    %116 = tpu.concatenate %115, %114 in 1 : vector<4x367xbf16>, vector<4x17xbf16> -> vector<4x384xbf16>
    %cst_77 = arith.constant dense<0.000000e+00> : vector<4x384xf32>
    %117 = tpu.matmul %113, %116, %cst_77 {dimension_numbers = #tpu.dot_dimension_numbers<[1], [0], [0], [1], [0, 0, 1, 1], [], []>} : vector<4x4xbf16>, vector<4x384xbf16>, vector<4x384xf32> -> vector<4x384xf32>
    %118 = arith.addf %111, %117 : vector<4x384xf32>
    %c7_78 = arith.constant 7 : index
    %c0_79 = arith.constant 0 : index
    %c0_80 = arith.constant 0 : index
    %119 = vector.load %arg5[%c7_78, %c0_79, %c0_80] : memref<9x4x4xbf16, #tpu.memory_space<vmem>>, vector<1x4x4xbf16>
    %120 = vector.shape_cast %119 : vector<1x4x4xbf16> to vector<4x4xbf16>
    %cst_81 = arith.constant 0.000000e+00 : bf16
    %121 = vector.broadcast %cst_81 : bf16 to vector<4x18xbf16>
    %122 = vector.extract_strided_slice %73 {offsets = [0, 18], sizes = [4, 366], strides = [1, 1]} : vector<4x384xbf16> to vector<4x366xbf16>
    %123 = tpu.concatenate %122, %121 in 1 : vector<4x366xbf16>, vector<4x18xbf16> -> vector<4x384xbf16>
    %cst_82 = arith.constant dense<0.000000e+00> : vector<4x384xf32>
    %124 = tpu.matmul %120, %123, %cst_82 {dimension_numbers = #tpu.dot_dimension_numbers<[1], [0], [0], [1], [0, 0, 1, 1], [], []>} : vector<4x4xbf16>, vector<4x384xbf16>, vector<4x384xf32> -> vector<4x384xf32>
    %125 = arith.addf %118, %124 : vector<4x384xf32>
    %c8_83 = arith.constant 8 : index
    %c0_84 = arith.constant 0 : index
    %c0_85 = arith.constant 0 : index
    %126 = vector.load %arg5[%c8_83, %c0_84, %c0_85] : memref<9x4x4xbf16, #tpu.memory_space<vmem>>, vector<1x4x4xbf16>
    %127 = vector.shape_cast %126 : vector<1x4x4xbf16> to vector<4x4xbf16>
    %cst_86 = arith.constant 0.000000e+00 : bf16
    %128 = vector.broadcast %cst_86 : bf16 to vector<4x19xbf16>
    %129 = vector.extract_strided_slice %73 {offsets = [0, 19], sizes = [4, 365], strides = [1, 1]} : vector<4x384xbf16> to vector<4x365xbf16>
    %130 = tpu.concatenate %129, %128 in 1 : vector<4x365xbf16>, vector<4x19xbf16> -> vector<4x384xbf16>
    %cst_87 = arith.constant dense<0.000000e+00> : vector<4x384xf32>
    %131 = tpu.matmul %127, %130, %cst_87 {dimension_numbers = #tpu.dot_dimension_numbers<[1], [0], [0], [1], [0, 0, 1, 1], [], []>} : vector<4x4xbf16>, vector<4x384xbf16>, vector<4x384xf32> -> vector<4x384xf32>
    %132 = arith.addf %125, %131 : vector<4x384xf32>
    %c0_88 = arith.constant 0 : index
    %c0_89 = arith.constant 0 : index
    %133 = vector.load %arg6[%c0_88, %c0_89] : memref<4x1xf32, #tpu.memory_space<vmem>>, vector<4x1xf32>
    %134 = vector.broadcast %133 : vector<4x1xf32> to vector<4x384xf32>
    %135 = arith.mulf %132, %134 : vector<4x384xf32>
    %c0_90 = arith.constant 0 : index
    %c0_91 = arith.constant 0 : index
    %136 = vector.load %arg7[%c0_90, %c0_91] : memref<4x1xf32, #tpu.memory_space<vmem>>, vector<4x1xf32>
    %137 = vector.broadcast %136 : vector<4x1xf32> to vector<4x384xf32>
    %138 = arith.addf %135, %137 : vector<4x384xf32>
    %139 = arith.addf %138, %2 : vector<4x384xf32>
    %cst_92 = arith.constant 0.000000e+00 : f32
    %140 = vector.broadcast %cst_92 : f32 to vector<4x384xf32>
    %141 = arith.maximumf %139, %140 : vector<4x384xf32>
    %c0_93 = arith.constant 0 : index
    %c0_94 = arith.constant 0 : index
    %c0_95 = arith.constant 0 : index
    %142 = vector.load %arg9[%c0_93, %c0_94, %c0_95] : memref<2x4x384xf32, #tpu.memory_space<vmem>>, vector<1x4x384xf32>
    %143 = vector.shape_cast %142 : vector<1x4x384xf32> to vector<4x384xf32>
    %144 = vector.shape_cast %141 : vector<4x384xf32> to vector<1x4x384xf32>
    tpu.vector_store %arg9[%c0_93, %c0_94, %c0_95], %144 {strides = array<i32>} : memref<2x4x384xf32, #tpu.memory_space<vmem>>, vector<1x4x384xf32>,
    %c1_96 = arith.constant 1 : index
    %c0_97 = arith.constant 0 : index
    %c0_98 = arith.constant 0 : index
    %145 = vector.load %arg1[%c1_96, %c0_97, %c0_98] : memref<2x4x384xf32, #tpu.memory_space<vmem>>, vector<1x4x384xf32>
    %146 = vector.shape_cast %145 : vector<1x4x384xf32> to vector<4x384xf32>
    %147 = arith.truncf %146 : vector<4x384xf32> to vector<4x384xbf16>
    %c0_99 = arith.constant 0 : index
    %c0_100 = arith.constant 0 : index
    %c0_101 = arith.constant 0 : index
    %148 = vector.load %arg2[%c0_99, %c0_100, %c0_101] : memref<9x4x4xbf16, #tpu.memory_space<vmem>>, vector<1x4x4xbf16>
    %149 = vector.shape_cast %148 : vector<1x4x4xbf16> to vector<4x4xbf16>
    %cst_102 = arith.constant 0.000000e+00 : bf16
    %150 = vector.broadcast %cst_102 : bf16 to vector<4x19xbf16>
    %151 = vector.extract_strided_slice %147 {offsets = [0, 0], sizes = [4, 365], strides = [1, 1]} : vector<4x384xbf16> to vector<4x365xbf16>
    %152 = tpu.concatenate %150, %151 in 1 : vector<4x19xbf16>, vector<4x365xbf16> -> vector<4x384xbf16>
    %cst_103 = arith.constant dense<0.000000e+00> : vector<4x384xf32>
    %153 = tpu.matmul %149, %152, %cst_103 {dimension_numbers = #tpu.dot_dimension_numbers<[1], [0], [0], [1], [0, 0, 1, 1], [], []>} : vector<4x4xbf16>, vector<4x384xbf16>, vector<4x384xf32> -> vector<4x384xf32>
    %c1_104 = arith.constant 1 : index
    %c0_105 = arith.constant 0 : index
    %c0_106 = arith.constant 0 : index
    %154 = vector.load %arg2[%c1_104, %c0_105, %c0_106] : memref<9x4x4xbf16, #tpu.memory_space<vmem>>, vector<1x4x4xbf16>
    %155 = vector.shape_cast %154 : vector<1x4x4xbf16> to vector<4x4xbf16>
    %cst_107 = arith.constant 0.000000e+00 : bf16
    %156 = vector.broadcast %cst_107 : bf16 to vector<4x18xbf16>
    %157 = vector.extract_strided_slice %147 {offsets = [0, 0], sizes = [4, 366], strides = [1, 1]} : vector<4x384xbf16> to vector<4x366xbf16>
    %158 = tpu.concatenate %156, %157 in 1 : vector<4x18xbf16>, vector<4x366xbf16> -> vector<4x384xbf16>
    %cst_108 = arith.constant dense<0.000000e+00> : vector<4x384xf32>
    %159 = tpu.matmul %155, %158, %cst_108 {dimension_numbers = #tpu.dot_dimension_numbers<[1], [0], [0], [1], [0, 0, 1, 1], [], []>} : vector<4x4xbf16>, vector<4x384xbf16>, vector<4x384xf32> -> vector<4x384xf32>
    %160 = arith.addf %153, %159 : vector<4x384xf32>
    %c2_109 = arith.constant 2 : index
    %c0_110 = arith.constant 0 : index
    %c0_111 = arith.constant 0 : index
    %161 = vector.load %arg2[%c2_109, %c0_110, %c0_111] : memref<9x4x4xbf16, #tpu.memory_space<vmem>>, vector<1x4x4xbf16>
    %162 = vector.shape_cast %161 : vector<1x4x4xbf16> to vector<4x4xbf16>
    %cst_112 = arith.constant 0.000000e+00 : bf16
    %163 = vector.broadcast %cst_112 : bf16 to vector<4x17xbf16>
    %164 = vector.extract_strided_slice %147 {offsets = [0, 0], sizes = [4, 367], strides = [1, 1]} : vector<4x384xbf16> to vector<4x367xbf16>
    %165 = tpu.concatenate %163, %164 in 1 : vector<4x17xbf16>, vector<4x367xbf16> -> vector<4x384xbf16>
    %cst_113 = arith.constant dense<0.000000e+00> : vector<4x384xf32>
    %166 = tpu.matmul %162, %165, %cst_113 {dimension_numbers = #tpu.dot_dimension_numbers<[1], [0], [0], [1], [0, 0, 1, 1], [], []>} : vector<4x4xbf16>, vector<4x384xbf16>, vector<4x384xf32> -> vector<4x384xf32>
    %167 = arith.addf %160, %166 : vector<4x384xf32>
    %c3_114 = arith.constant 3 : index
    %c0_115 = arith.constant 0 : index
    %c0_116 = arith.constant 0 : index
    %168 = vector.load %arg2[%c3_114, %c0_115, %c0_116] : memref<9x4x4xbf16, #tpu.memory_space<vmem>>, vector<1x4x4xbf16>
    %169 = vector.shape_cast %168 : vector<1x4x4xbf16> to vector<4x4xbf16>
    %cst_117 = arith.constant 0.000000e+00 : bf16
    %170 = vector.broadcast %cst_117 : bf16 to vector<4x1xbf16>
    %171 = vector.extract_strided_slice %147 {offsets = [0, 0], sizes = [4, 383], strides = [1, 1]} : vector<4x384xbf16> to vector<4x383xbf16>
    %172 = tpu.concatenate %170, %171 in 1 : vector<4x1xbf16>, vector<4x383xbf16> -> vector<4x384xbf16>
    %cst_118 = arith.constant dense<0.000000e+00> : vector<4x384xf32>
    %173 = tpu.matmul %169, %172, %cst_118 {dimension_numbers = #tpu.dot_dimension_numbers<[1], [0], [0], [1], [0, 0, 1, 1], [], []>} : vector<4x4xbf16>, vector<4x384xbf16>, vector<4x384xf32> -> vector<4x384xf32>
    %174 = arith.addf %167, %173 : vector<4x384xf32>
    %c4_119 = arith.constant 4 : index
    %c0_120 = arith.constant 0 : index
    %c0_121 = arith.constant 0 : index
    %175 = vector.load %arg2[%c4_119, %c0_120, %c0_121] : memref<9x4x4xbf16, #tpu.memory_space<vmem>>, vector<1x4x4xbf16>
    %176 = vector.shape_cast %175 : vector<1x4x4xbf16> to vector<4x4xbf16>
    %cst_122 = arith.constant dense<0.000000e+00> : vector<4x384xf32>
    %177 = tpu.matmul %176, %147, %cst_122 {dimension_numbers = #tpu.dot_dimension_numbers<[1], [0], [0], [1], [0, 0, 1, 1], [], []>} : vector<4x4xbf16>, vector<4x384xbf16>, vector<4x384xf32> -> vector<4x384xf32>
    %178 = arith.addf %174, %177 : vector<4x384xf32>
    %c5_123 = arith.constant 5 : index
    %c0_124 = arith.constant 0 : index
    %c0_125 = arith.constant 0 : index
    %179 = vector.load %arg2[%c5_123, %c0_124, %c0_125] : memref<9x4x4xbf16, #tpu.memory_space<vmem>>, vector<1x4x4xbf16>
    %180 = vector.shape_cast %179 : vector<1x4x4xbf16> to vector<4x4xbf16>
    %cst_126 = arith.constant 0.000000e+00 : bf16
    %181 = vector.broadcast %cst_126 : bf16 to vector<4x1xbf16>
    %182 = vector.extract_strided_slice %147 {offsets = [0, 1], sizes = [4, 383], strides = [1, 1]} : vector<4x384xbf16> to vector<4x383xbf16>
    %183 = tpu.concatenate %182, %181 in 1 : vector<4x383xbf16>, vector<4x1xbf16> -> vector<4x384xbf16>
    %cst_127 = arith.constant dense<0.000000e+00> : vector<4x384xf32>
    %184 = tpu.matmul %180, %183, %cst_127 {dimension_numbers = #tpu.dot_dimension_numbers<[1], [0], [0], [1], [0, 0, 1, 1], [], []>} : vector<4x4xbf16>, vector<4x384xbf16>, vector<4x384xf32> -> vector<4x384xf32>
    %185 = arith.addf %178, %184 : vector<4x384xf32>
    %c6_128 = arith.constant 6 : index
    %c0_129 = arith.constant 0 : index
    %c0_130 = arith.constant 0 : index
    %186 = vector.load %arg2[%c6_128, %c0_129, %c0_130] : memref<9x4x4xbf16, #tpu.memory_space<vmem>>, vector<1x4x4xbf16>
    %187 = vector.shape_cast %186 : vector<1x4x4xbf16> to vector<4x4xbf16>
    %cst_131 = arith.constant 0.000000e+00 : bf16
    %188 = vector.broadcast %cst_131 : bf16 to vector<4x17xbf16>
    %189 = vector.extract_strided_slice %147 {offsets = [0, 17], sizes = [4, 367], strides = [1, 1]} : vector<4x384xbf16> to vector<4x367xbf16>
    %190 = tpu.concatenate %189, %188 in 1 : vector<4x367xbf16>, vector<4x17xbf16> -> vector<4x384xbf16>
    %cst_132 = arith.constant dense<0.000000e+00> : vector<4x384xf32>
    %191 = tpu.matmul %187, %190, %cst_132 {dimension_numbers = #tpu.dot_dimension_numbers<[1], [0], [0], [1], [0, 0, 1, 1], [], []>} : vector<4x4xbf16>, vector<4x384xbf16>, vector<4x384xf32> -> vector<4x384xf32>
    %192 = arith.addf %185, %191 : vector<4x384xf32>
    %c7_133 = arith.constant 7 : index
    %c0_134 = arith.constant 0 : index
    %c0_135 = arith.constant 0 : index
    %193 = vector.load %arg2[%c7_133, %c0_134, %c0_135] : memref<9x4x4xbf16, #tpu.memory_space<vmem>>, vector<1x4x4xbf16>
    %194 = vector.shape_cast %193 : vector<1x4x4xbf16> to vector<4x4xbf16>
    %cst_136 = arith.constant 0.000000e+00 : bf16
    %195 = vector.broadcast %cst_136 : bf16 to vector<4x18xbf16>
    %196 = vector.extract_strided_slice %147 {offsets = [0, 18], sizes = [4, 366], strides = [1, 1]} : vector<4x384xbf16> to vector<4x366xbf16>
    %197 = tpu.concatenate %196, %195 in 1 : vector<4x366xbf16>, vector<4x18xbf16> -> vector<4x384xbf16>
    %cst_137 = arith.constant dense<0.000000e+00> : vector<4x384xf32>
    %198 = tpu.matmul %194, %197, %cst_137 {dimension_numbers = #tpu.dot_dimension_numbers<[1], [0], [0], [1], [0, 0, 1, 1], [], []>} : vector<4x4xbf16>, vector<4x384xbf16>, vector<4x384xf32> -> vector<4x384xf32>
    %199 = arith.addf %192, %198 : vector<4x384xf32>
    %c8_138 = arith.constant 8 : index
    %c0_139 = arith.constant 0 : index
    %c0_140 = arith.constant 0 : index
    %200 = vector.load %arg2[%c8_138, %c0_139, %c0_140] : memref<9x4x4xbf16, #tpu.memory_space<vmem>>, vector<1x4x4xbf16>
    %201 = vector.shape_cast %200 : vector<1x4x4xbf16> to vector<4x4xbf16>
    %cst_141 = arith.constant 0.000000e+00 : bf16
    %202 = vector.broadcast %cst_141 : bf16 to vector<4x19xbf16>
    %203 = vector.extract_strided_slice %147 {offsets = [0, 19], sizes = [4, 365], strides = [1, 1]} : vector<4x384xbf16> to vector<4x365xbf16>
    %204 = tpu.concatenate %203, %202 in 1 : vector<4x365xbf16>, vector<4x19xbf16> -> vector<4x384xbf16>
    %cst_142 = arith.constant dense<0.000000e+00> : vector<4x384xf32>
    %205 = tpu.matmul %201, %204, %cst_142 {dimension_numbers = #tpu.dot_dimension_numbers<[1], [0], [0], [1], [0, 0, 1, 1], [], []>} : vector<4x4xbf16>, vector<4x384xbf16>, vector<4x384xf32> -> vector<4x384xf32>
    %206 = arith.addf %199, %205 : vector<4x384xf32>
    %c0_143 = arith.constant 0 : index
    %c0_144 = arith.constant 0 : index
    %207 = vector.load %arg3[%c0_143, %c0_144] : memref<4x1xf32, #tpu.memory_space<vmem>>, vector<4x1xf32>
    %208 = vector.broadcast %207 : vector<4x1xf32> to vector<4x384xf32>
    %209 = arith.mulf %206, %208 : vector<4x384xf32>
    %c0_145 = arith.constant 0 : index
    %c0_146 = arith.constant 0 : index
    %210 = vector.load %arg4[%c0_145, %c0_146] : memref<4x1xf32, #tpu.memory_space<vmem>>, vector<4x1xf32>
    %211 = vector.broadcast %210 : vector<4x1xf32> to vector<4x384xf32>
    %212 = arith.addf %209, %211 : vector<4x384xf32>
    %cst_147 = arith.constant 0.000000e+00 : f32
    %213 = vector.broadcast %cst_147 : f32 to vector<4x384xf32>
    %214 = arith.maximumf %212, %213 : vector<4x384xf32>
    %215 = vector.broadcast %0 : vector<1x384xf32> to vector<4x384xf32>
    %216 = arith.mulf %214, %215 : vector<4x384xf32>
    %217 = arith.truncf %216 : vector<4x384xf32> to vector<4x384xbf16>
    %c0_148 = arith.constant 0 : index
    %c0_149 = arith.constant 0 : index
    %c0_150 = arith.constant 0 : index
    %218 = vector.load %arg5[%c0_148, %c0_149, %c0_150] : memref<9x4x4xbf16, #tpu.memory_space<vmem>>, vector<1x4x4xbf16>
    %219 = vector.shape_cast %218 : vector<1x4x4xbf16> to vector<4x4xbf16>
    %cst_151 = arith.constant 0.000000e+00 : bf16
    %220 = vector.broadcast %cst_151 : bf16 to vector<4x19xbf16>
    %221 = vector.extract_strided_slice %217 {offsets = [0, 0], sizes = [4, 365], strides = [1, 1]} : vector<4x384xbf16> to vector<4x365xbf16>
    %222 = tpu.concatenate %220, %221 in 1 : vector<4x19xbf16>, vector<4x365xbf16> -> vector<4x384xbf16>
    %cst_152 = arith.constant dense<0.000000e+00> : vector<4x384xf32>
    %223 = tpu.matmul %219, %222, %cst_152 {dimension_numbers = #tpu.dot_dimension_numbers<[1], [0], [0], [1], [0, 0, 1, 1], [], []>} : vector<4x4xbf16>, vector<4x384xbf16>, vector<4x384xf32> -> vector<4x384xf32>
    %c1_153 = arith.constant 1 : index
    %c0_154 = arith.constant 0 : index
    %c0_155 = arith.constant 0 : index
    %224 = vector.load %arg5[%c1_153, %c0_154, %c0_155] : memref<9x4x4xbf16, #tpu.memory_space<vmem>>, vector<1x4x4xbf16>
    %225 = vector.shape_cast %224 : vector<1x4x4xbf16> to vector<4x4xbf16>
    %cst_156 = arith.constant 0.000000e+00 : bf16
    %226 = vector.broadcast %cst_156 : bf16 to vector<4x18xbf16>
    %227 = vector.extract_strided_slice %217 {offsets = [0, 0], sizes = [4, 366], strides = [1, 1]} : vector<4x384xbf16> to vector<4x366xbf16>
    %228 = tpu.concatenate %226, %227 in 1 : vector<4x18xbf16>, vector<4x366xbf16> -> vector<4x384xbf16>
    %cst_157 = arith.constant dense<0.000000e+00> : vector<4x384xf32>
    %229 = tpu.matmul %225, %228, %cst_157 {dimension_numbers = #tpu.dot_dimension_numbers<[1], [0], [0], [1], [0, 0, 1, 1], [], []>} : vector<4x4xbf16>, vector<4x384xbf16>, vector<4x384xf32> -> vector<4x384xf32>
    %230 = arith.addf %223, %229 : vector<4x384xf32>
    %c2_158 = arith.constant 2 : index
    %c0_159 = arith.constant 0 : index
    %c0_160 = arith.constant 0 : index
    %231 = vector.load %arg5[%c2_158, %c0_159, %c0_160] : memref<9x4x4xbf16, #tpu.memory_space<vmem>>, vector<1x4x4xbf16>
    %232 = vector.shape_cast %231 : vector<1x4x4xbf16> to vector<4x4xbf16>
    %cst_161 = arith.constant 0.000000e+00 : bf16
    %233 = vector.broadcast %cst_161 : bf16 to vector<4x17xbf16>
    %234 = vector.extract_strided_slice %217 {offsets = [0, 0], sizes = [4, 367], strides = [1, 1]} : vector<4x384xbf16> to vector<4x367xbf16>
    %235 = tpu.concatenate %233, %234 in 1 : vector<4x17xbf16>, vector<4x367xbf16> -> vector<4x384xbf16>
    %cst_162 = arith.constant dense<0.000000e+00> : vector<4x384xf32>
    %236 = tpu.matmul %232, %235, %cst_162 {dimension_numbers = #tpu.dot_dimension_numbers<[1], [0], [0], [1], [0, 0, 1, 1], [], []>} : vector<4x4xbf16>, vector<4x384xbf16>, vector<4x384xf32> -> vector<4x384xf32>
    %237 = arith.addf %230, %236 : vector<4x384xf32>
    %c3_163 = arith.constant 3 : index
    %c0_164 = arith.constant 0 : index
    %c0_165 = arith.constant 0 : index
    %238 = vector.load %arg5[%c3_163, %c0_164, %c0_165] : memref<9x4x4xbf16, #tpu.memory_space<vmem>>, vector<1x4x4xbf16>
    %239 = vector.shape_cast %238 : vector<1x4x4xbf16> to vector<4x4xbf16>
    %cst_166 = arith.constant 0.000000e+00 : bf16
    %240 = vector.broadcast %cst_166 : bf16 to vector<4x1xbf16>
    %241 = vector.extract_strided_slice %217 {offsets = [0, 0], sizes = [4, 383], strides = [1, 1]} : vector<4x384xbf16> to vector<4x383xbf16>
    %242 = tpu.concatenate %240, %241 in 1 : vector<4x1xbf16>, vector<4x383xbf16> -> vector<4x384xbf16>
    %cst_167 = arith.constant dense<0.000000e+00> : vector<4x384xf32>
    %243 = tpu.matmul %239, %242, %cst_167 {dimension_numbers = #tpu.dot_dimension_numbers<[1], [0], [0], [1], [0, 0, 1, 1], [], []>} : vector<4x4xbf16>, vector<4x384xbf16>, vector<4x384xf32> -> vector<4x384xf32>
    %244 = arith.addf %237, %243 : vector<4x384xf32>
    %c4_168 = arith.constant 4 : index
    %c0_169 = arith.constant 0 : index
    %c0_170 = arith.constant 0 : index
    %245 = vector.load %arg5[%c4_168, %c0_169, %c0_170] : memref<9x4x4xbf16, #tpu.memory_space<vmem>>, vector<1x4x4xbf16>
    %246 = vector.shape_cast %245 : vector<1x4x4xbf16> to vector<4x4xbf16>
    %cst_171 = arith.constant dense<0.000000e+00> : vector<4x384xf32>
    %247 = tpu.matmul %246, %217, %cst_171 {dimension_numbers = #tpu.dot_dimension_numbers<[1], [0], [0], [1], [0, 0, 1, 1], [], []>} : vector<4x4xbf16>, vector<4x384xbf16>, vector<4x384xf32> -> vector<4x384xf32>
    %248 = arith.addf %244, %247 : vector<4x384xf32>
    %c5_172 = arith.constant 5 : index
    %c0_173 = arith.constant 0 : index
    %c0_174 = arith.constant 0 : index
    %249 = vector.load %arg5[%c5_172, %c0_173, %c0_174] : memref<9x4x4xbf16, #tpu.memory_space<vmem>>, vector<1x4x4xbf16>
    %250 = vector.shape_cast %249 : vector<1x4x4xbf16> to vector<4x4xbf16>
    %cst_175 = arith.constant 0.000000e+00 : bf16
    %251 = vector.broadcast %cst_175 : bf16 to vector<4x1xbf16>
    %252 = vector.extract_strided_slice %217 {offsets = [0, 1], sizes = [4, 383], strides = [1, 1]} : vector<4x384xbf16> to vector<4x383xbf16>
    %253 = tpu.concatenate %252, %251 in 1 : vector<4x383xbf16>, vector<4x1xbf16> -> vector<4x384xbf16>
    %cst_176 = arith.constant dense<0.000000e+00> : vector<4x384xf32>
    %254 = tpu.matmul %250, %253, %cst_176 {dimension_numbers = #tpu.dot_dimension_numbers<[1], [0], [0], [1], [0, 0, 1, 1], [], []>} : vector<4x4xbf16>, vector<4x384xbf16>, vector<4x384xf32> -> vector<4x384xf32>
    %255 = arith.addf %248, %254 : vector<4x384xf32>
    %c6_177 = arith.constant 6 : index
    %c0_178 = arith.constant 0 : index
    %c0_179 = arith.constant 0 : index
    %256 = vector.load %arg5[%c6_177, %c0_178, %c0_179] : memref<9x4x4xbf16, #tpu.memory_space<vmem>>, vector<1x4x4xbf16>
    %257 = vector.shape_cast %256 : vector<1x4x4xbf16> to vector<4x4xbf16>
    %cst_180 = arith.constant 0.000000e+00 : bf16
    %258 = vector.broadcast %cst_180 : bf16 to vector<4x17xbf16>
    %259 = vector.extract_strided_slice %217 {offsets = [0, 17], sizes = [4, 367], strides = [1, 1]} : vector<4x384xbf16> to vector<4x367xbf16>
    %260 = tpu.concatenate %259, %258 in 1 : vector<4x367xbf16>, vector<4x17xbf16> -> vector<4x384xbf16>
    %cst_181 = arith.constant dense<0.000000e+00> : vector<4x384xf32>
    %261 = tpu.matmul %257, %260, %cst_181 {dimension_numbers = #tpu.dot_dimension_numbers<[1], [0], [0], [1], [0, 0, 1, 1], [], []>} : vector<4x4xbf16>, vector<4x384xbf16>, vector<4x384xf32> -> vector<4x384xf32>
    %262 = arith.addf %255, %261 : vector<4x384xf32>
    %c7_182 = arith.constant 7 : index
    %c0_183 = arith.constant 0 : index
    %c0_184 = arith.constant 0 : index
    %263 = vector.load %arg5[%c7_182, %c0_183, %c0_184] : memref<9x4x4xbf16, #tpu.memory_space<vmem>>, vector<1x4x4xbf16>
    %264 = vector.shape_cast %263 : vector<1x4x4xbf16> to vector<4x4xbf16>
    %cst_185 = arith.constant 0.000000e+00 : bf16
    %265 = vector.broadcast %cst_185 : bf16 to vector<4x18xbf16>
    %266 = vector.extract_strided_slice %217 {offsets = [0, 18], sizes = [4, 366], strides = [1, 1]} : vector<4x384xbf16> to vector<4x366xbf16>
    %267 = tpu.concatenate %266, %265 in 1 : vector<4x366xbf16>, vector<4x18xbf16> -> vector<4x384xbf16>
    %cst_186 = arith.constant dense<0.000000e+00> : vector<4x384xf32>
    %268 = tpu.matmul %264, %267, %cst_186 {dimension_numbers = #tpu.dot_dimension_numbers<[1], [0], [0], [1], [0, 0, 1, 1], [], []>} : vector<4x4xbf16>, vector<4x384xbf16>, vector<4x384xf32> -> vector<4x384xf32>
    %269 = arith.addf %262, %268 : vector<4x384xf32>
    %c8_187 = arith.constant 8 : index
    %c0_188 = arith.constant 0 : index
    %c0_189 = arith.constant 0 : index
    %270 = vector.load %arg5[%c8_187, %c0_188, %c0_189] : memref<9x4x4xbf16, #tpu.memory_space<vmem>>, vector<1x4x4xbf16>
    %271 = vector.shape_cast %270 : vector<1x4x4xbf16> to vector<4x4xbf16>
    %cst_190 = arith.constant 0.000000e+00 : bf16
    %272 = vector.broadcast %cst_190 : bf16 to vector<4x19xbf16>
    %273 = vector.extract_strided_slice %217 {offsets = [0, 19], sizes = [4, 365], strides = [1, 1]} : vector<4x384xbf16> to vector<4x365xbf16>
    %274 = tpu.concatenate %273, %272 in 1 : vector<4x365xbf16>, vector<4x19xbf16> -> vector<4x384xbf16>
    %cst_191 = arith.constant dense<0.000000e+00> : vector<4x384xf32>
    %275 = tpu.matmul %271, %274, %cst_191 {dimension_numbers = #tpu.dot_dimension_numbers<[1], [0], [0], [1], [0, 0, 1, 1], [], []>} : vector<4x4xbf16>, vector<4x384xbf16>, vector<4x384xf32> -> vector<4x384xf32>
    %276 = arith.addf %269, %275 : vector<4x384xf32>
    %c0_192 = arith.constant 0 : index
    %c0_193 = arith.constant 0 : index
    %277 = vector.load %arg6[%c0_192, %c0_193] : memref<4x1xf32, #tpu.memory_space<vmem>>, vector<4x1xf32>
    %278 = vector.broadcast %277 : vector<4x1xf32> to vector<4x384xf32>
    %279 = arith.mulf %276, %278 : vector<4x384xf32>
    %c0_194 = arith.constant 0 : index
    %c0_195 = arith.constant 0 : index
    %280 = vector.load %arg7[%c0_194, %c0_195] : memref<4x1xf32, #tpu.memory_space<vmem>>, vector<4x1xf32>
    %281 = vector.broadcast %280 : vector<4x1xf32> to vector<4x384xf32>
    %282 = arith.addf %279, %281 : vector<4x384xf32>
    %283 = arith.addf %282, %146 : vector<4x384xf32>
    %cst_196 = arith.constant 0.000000e+00 : f32
    %284 = vector.broadcast %cst_196 : f32 to vector<4x384xf32>
    %285 = arith.maximumf %283, %284 : vector<4x384xf32>
    %c1_197 = arith.constant 1 : index
    %c0_198 = arith.constant 0 : index
    %c0_199 = arith.constant 0 : index
    %286 = vector.load %arg9[%c1_197, %c0_198, %c0_199] : memref<2x4x384xf32, #tpu.memory_space<vmem>>, vector<1x4x384xf32>
    %287 = vector.shape_cast %286 : vector<1x4x384xf32> to vector<4x384xf32>
    %288 = vector.shape_cast %285 : vector<4x384xf32> to vector<1x4x384xf32>
    tpu.vector_store %arg9[%c1_197, %c0_198, %c0_199], %288 {strides = array<i32>} : memref<2x4x384xf32, #tpu.memory_space<vmem>>, vector<1x4x384xf32>,
    return
  }
  func.func @transform_0(%arg0: i32) -> (i32, i32, i32) {
    %c0_i32 = arith.constant 0 : i32
    %c0_i32_0 = arith.constant 0 : i32
    %c0_i32_1 = arith.constant 0 : i32
    return %arg0, %c0_i32, %c0_i32_0 : i32, i32, i32
  }
  func.func @transform_1(%arg0: i32) -> (i32, i32, i32) {
    %c0_i32 = arith.constant 0 : i32
    %c0_i32_0 = arith.constant 0 : i32
    %c0_i32_1 = arith.constant 0 : i32
    %c0_i32_2 = arith.constant 0 : i32
    return %c0_i32, %c0_i32_0, %c0_i32_1 : i32, i32, i32
  }
  func.func @transform_2(%arg0: i32) -> (i32, i32) {
    %c0_i32 = arith.constant 0 : i32
    %c0_i32_0 = arith.constant 0 : i32
    %c0_i32_1 = arith.constant 0 : i32
    return %c0_i32, %c0_i32_0 : i32, i32
  }
  func.func @transform_3(%arg0: i32) -> (i32, i32) {
    %c0_i32 = arith.constant 0 : i32
    %c0_i32_0 = arith.constant 0 : i32
    %c0_i32_1 = arith.constant 0 : i32
    return %c0_i32, %c0_i32_0 : i32, i32
  }
  func.func @transform_4(%arg0: i32) -> (i32, i32, i32) {
    %c0_i32 = arith.constant 0 : i32
    %c0_i32_0 = arith.constant 0 : i32
    %c0_i32_1 = arith.constant 0 : i32
    %c0_i32_2 = arith.constant 0 : i32
    return %c0_i32, %c0_i32_0, %c0_i32_1 : i32, i32, i32
  }
  func.func @transform_5(%arg0: i32) -> (i32, i32) {
    %c0_i32 = arith.constant 0 : i32
    %c0_i32_0 = arith.constant 0 : i32
    %c0_i32_1 = arith.constant 0 : i32
    return %c0_i32, %c0_i32_0 : i32, i32
  }
  func.func @transform_6(%arg0: i32) -> (i32, i32) {
    %c0_i32 = arith.constant 0 : i32
    %c0_i32_0 = arith.constant 0 : i32
    %c0_i32_1 = arith.constant 0 : i32
    return %c0_i32, %c0_i32_0 : i32, i32
  }
  func.func @transform_7(%arg0: i32) -> (i32, i32) {
    %c0_i32 = arith.constant 0 : i32
    %c0_i32_0 = arith.constant 0 : i32
    %c0_i32_1 = arith.constant 0 : i32
    return %c0_i32, %c0_i32_0 : i32, i32
  }
  func.func @transform_8(%arg0: i32) -> (i32, i32, i32) {
    %c0_i32 = arith.constant 0 : i32
    %c0_i32_0 = arith.constant 0 : i32
    %c0_i32_1 = arith.constant 0 : i32
    return %arg0, %c0_i32, %c0_i32_0 : i32, i32, i32
  }
}

</mosaic_0001>

<bundles_post_ra>
// kernel: tpu_custom_call.1
= control target key start
LH: loop header
LB: loop body
LE: loop exit
PB: predicated region body
PF: predicated region fallthrough
CT: control target
= control target key end

     0   :  { %s4731_s9 = smov 18   ;;  %v4732_v6 = vmov 0.0   ;;  %v4733_v7 = vmov 0   ;;  %s5642_s0 = inlined_call_operand.vmem [shape: f32[2,4,384], index: 0, kind: input, shape index: {}]   ;;  %s5643_s1 = inlined_call_operand.vmem [shape: bf16[9,4,4], index: 1, kind: input, shape index: {}]   ;;  %s5644_s2 = inlined_call_operand.vmem [shape: f32[4,1], index: 2, kind: input, shape index: {}]   ;;  %s5645_s3 = inlined_call_operand.vmem [shape: f32[4,1], index: 3, kind: input, shape index: {}]   ;;  %s5646_s4 = inlined_call_operand.vmem [shape: bf16[9,4,4], index: 4, kind: input, shape index: {}]   ;;  %s5647_s5 = inlined_call_operand.vmem [shape: f32[4,1], index: 5, kind: input, shape index: {}]   ;;  %s5648_s6 = inlined_call_operand.vmem [shape: f32[4,1], index: 6, kind: input, shape index: {}]   ;;  %s5649_s7 = inlined_call_operand.vmem [shape: f32[1,384], index: 7, kind: input, shape index: {}]   ;;  %s5650_s8 = inlined_call_operand.hbm [shape: f32[2,4,384], index: 8, kind: output, shape index: {}]  }
   0x1   :  { %v32_v0 = vld [vmem:[%s5642_s0] sm:$0xff]  ;;  %v33_v1 = vld [vmem:[%s5642_s0 + $0x8] sm:$0xf]  ;;  %4213 = vmatprep.subr.bf16.mxu1 %v4732_v6  ;;  %116 = vmatprep.mubr.bf16.mxu0 %v4733_v7 }
   0x2   :  { %v4796_v2 = vpack.c.bf16 %v32_v0, %v32_v0  ;;  %v4798_v3 = vpack.c.bf16 %v33_v1, %v33_v1  ;;  %v4800_v4 = vcombine.high %v32_v0, %v32_v0 }
   0x4   :  { %59 = vrot.lane.b32.xlu0 %v4796_v2, %s4731_s9  ;;  %63 = vrot.lane.b32.xlu1 %v4798_v3, %s4731_s9  ;;  %v4808_v5 = vpack.c.bf16 %v4800_v4, %v4800_v4 }
   0x5   :  { %13 = vsyncpa [#allocation3], 0  ;;  %vm4734_vm0 = vmmov 0   ;;  %4699 = vset.pattern.permute.xlu0 %v4733_v7  ;;  %4700 = vset.pattern.permute.xlu1 %v4733_v7  ;;  %s4735_s10 = smov 19   ;;  %s4736_s11 = smov 17   ;;  %vm65_vm1 = vcmask 146432  }
   0x6   :  { %4215 = vmatprep.mubr.msk.bf16.mxu1 %vm4734_vm0, %v4732_v6  ;;  %s4737_s12 = smov 1   ;;  %s4738_s13 = smov 127   ;;  %v1009_v8 = vld [vmem:[%s5644_s2] sm:$0xf]  ;;  %vm75_vm2 = vcmask 1041408   ;;  %vm50_vm3 = vcmask 154624  }
   0x7   :  { %s4739_s14 = smov 111   ;;  %s4740_s15 = smov 110   ;;  %v1018_v9 = vld [vmem:[%s5645_s3] sm:$0xf]  ;;  %vm71_vm4 = vcmask 31744   ;;  %vm265_vm5 = vcmask 138240  }
   0x8   :  { %61 = vrot.lane.b32.xlu0 %v4808_v5, %s4731_s9  ;;  %44 = vrot.lane.b32.xlu1 %v4796_v2, %s4735_s10  ;;  %s4741_s16 = smov 109   ;;  %v3999_v20 = vld [vmem:[%s5643_s1 + $0x2] sm:$0x3]  ;;  %v40_v33 = vld [vmem:[%s5643_s1] sm:$0x3]  ;;  %vm374_vm6 = vcmask 7168  }
   0x9   :  { %v4006_v42 = vld [vmem:[%s5643_s1 + $0x4] sm:$0x3]  ;;  %v4010_v46 = vld [vmem:[%s5643_s1 + $0x6] sm:$0x3]  ;;  %vm581_vm7 = vcmask 1039360   ;;  %v481_v49 = vsel %vm75_vm2, %v4796_v2, 0 }
   0xa   :  { %v487_v50 = vsel %vm75_vm2, %v4798_v3, 0  ;;  %v4014_v55 = vld [vmem:[%s5643_s1 + $0x8] sm:$0x3]  ;;  %vm690_vm8 = vcmask 908288   ;;  %v4018_v0 = vld [vmem:[%s5643_s1 + $0xa] sm:$0x3] }
   0xb   :  { %vm799_vm9 = vcmask 900096   ;;  %vm908_vm10 = vcmask 891904  }
   0xc   :  { %48 = vrot.lane.b32.xlu1 %v4798_v3, %s4735_s10  ;;  %46 = vrot.lane.b32.xlu0 %v4808_v5, %s4735_s10 }
  0x10   :  { %259 = vrot.lane.b32.xlu0 %v4796_v2, %s4736_s11  ;;  %261 = vrot.lane.b32.xlu1 %v4808_v5, %s4736_s11 }
  0x14   :  { %263 = vrot.lane.b32.xlu0 %v4798_v3, %s4736_s11  ;;  %368 = vrot.lane.b32.xlu1 %v4796_v2, %s4737_s12 }
  0x18   :  { %372 = vrot.lane.b32.xlu1 %v4798_v3, %s4737_s12  ;;  %370 = vrot.lane.b32.xlu0 %v4808_v5, %s4737_s12 }
  0x1c   :  { %575 = vrot.lane.b32.xlu0 %v4796_v2, %s4738_s13  ;;  %577 = vrot.lane.b32.xlu1 %v4808_v5, %s4738_s13 }
  0x20   :  { %579 = vrot.lane.b32.xlu0 %v4798_v3, %s4738_s13  ;;  %684 = vrot.lane.b32.xlu1 %v4796_v2, %s4739_s14 }
  0x24   :  { %688 = vrot.lane.b32.xlu1 %v4798_v3, %s4739_s14  ;;  %686 = vrot.lane.b32.xlu0 %v4808_v5, %s4739_s14 }
  0x28   :  { %793 = vrot.lane.b32.xlu0 %v4796_v2, %s4740_s15  ;;  %795 = vrot.lane.b32.xlu1 %v4808_v5, %s4740_s15 }
  0x2c   :  { %797 = vrot.lane.b32.xlu0 %v4798_v3, %s4740_s15  ;;  %902 = vrot.lane.b32.xlu1 %v4796_v2, %s4741_s16 }
  0x30   :  { %906 = vrot.lane.b32.xlu1 %v4798_v3, %s4741_s16  ;;  %904 = vrot.lane.b32.xlu0 %v4808_v5, %s4741_s16 }
  0x34   :  { %1012 = vperm.xlu0 %4699, %v1009_v8   ;;  %1021 = vperm.xlu1 %4700, %v1018_v9  }
  0x76   :  { %v60_v10 = vpop.permute.xlu0 %59  ;;  %v64_v11 = vpop.permute.xlu1 %63 }
  0x77   :  { %v70_v12 = vsel %vm65_vm1, 0, %v60_v10 }
  0x78   :  { %v76_v17 = vsel %vm75_vm2, %v70_v12, 0  ;;  %v4022_v12 = vld [vmem:[%s5643_s1 + $0xc] sm:$0x3] }
  0x7a   :  { %v62_v13 = vpop.permute.xlu0 %61  ;;  %v45_v14 = vpop.permute.xlu1 %44 }
  0x7b   :  { %v66_v15 = vsel %vm65_vm1, %v60_v10, %v62_v13  ;;  %v67_v16 = vsel %vm65_vm1, %v62_v13, %v64_v11  ;;  %v56_v19 = vsel %vm50_vm3, 0, %v45_v14 }
  0x7c   :  { %4000 = vmatprep.subr.msk.bf16.mxu0 %vm75_vm2, %v66_v15  ;;  %v82_v18 = vsel %vm75_vm2, %v67_v16, 0  ;;  %v168_v25 = vsel %vm75_vm2, %v56_v19, 0 }
  0x7d   :  { %85 = vmatpush1.bf16.msra.mxu0 %v76_v17  ;;  %4214 = vmatpush3.bf16.msra.mxu1 %v82_v18 }
  0x7e   :  { %v49_v21 = vpop.permute.xlu1 %48  ;;  %v47_v22 = vpop.permute.xlu0 %46  ;;  %4219 = vmatprep.subr.bf16.mxu1 %v4732_v6 }
  0x7f   :  { %v52_v23 = vsel %vm50_vm3, %v47_v22, %v49_v21  ;;  %v51_v24 = vsel %vm50_vm3, %v45_v14, %v47_v22 }
  0x80   :  { %4001 = vmatmul.mubr.msk.bf16.vlgmr.msra.gmra.mrb[0].mxu0 %vm71_vm4, %v3999_v20  ;;  %4216 = vmatmul.mubr.msk.bf16.vlgmr.msra.gmra.mrb[0].mxu1 %vm71_vm4, %v3999_v20  ;;  %v174_v26 = vsel %vm75_vm2, %v52_v23, 0  ;;  %v4026_v20 = vld [vmem:[%s5643_s1 + $0xe] sm:$0x3]  ;;  %v4030_v23 = vld [vmem:[%s5643_s1 + $0x10] sm:$0x3] }
  0x81   :  { %4003 = vmatprep.subr.msk.bf16.mxu0 %vm75_vm2, %v51_v24  ;;  %4220 = vmatpush3.bf16.msra.mxu1 %v174_v26  ;;  %v1031_v24 = vlaneseq }
  0x82   :  { %177 = vmatpush1.bf16.msra.mxu0 %v168_v25  ;;  %v260_v27 = vpop.permute.xlu0 %259  ;;  %208 = vmatprep.mubr.bf16.mxu0 %v4733_v7  ;;  %v262_v28 = vpop.permute.xlu1 %261 }
  0x83   :  { %4221 = vmatprep.mubr.msk.bf16.mxu1 %vm4734_vm0, %v4732_v6  ;;  %v266_v29 = vsel %vm265_vm5, %v260_v27, %v262_v28  ;;  %4225 = vmatprep.subr.bf16.mxu1 %v4732_v6  ;;  %v270_v31 = vsel %vm265_vm5, 0, %v260_v27  ;;  %v1032_v25 = vshrl.u32 %v1031_v24, 7 }
  0x84   :  { %4007 = vmatprep.subr.msk.bf16.mxu0 %vm75_vm2, %v266_v29  ;;  %v274_v34 = vsel %vm75_vm2, %v270_v31, 0 }
  0x85   :  { %v1033_v27 = vsub.s32 0, %v1032_v25  ;;  %v1037_v31 = vsub.s32 1, %v1032_v25 }
  0x86   :  { %v264_v30 = vpop.permute.xlu0 %263  ;;  %v369_v36 = vpop.permute.xlu1 %368 }
  0x87   :  { %v267_v32 = vsel %vm265_vm5, %v262_v28, %v264_v30  ;;  %v379_v40 = vsel %vm374_vm6, 0, %v369_v36 }
  0x88   :  { %v280_v35 = vsel %vm75_vm2, %v267_v32, 0  ;;  %v383_v43 = vsel %vm75_vm2, %v379_v40, 0  ;;  %v31_v32 = vld [vmem:[%s5649_s7] sm:$0x7] }
  0x8a   :  { %v371_v37 = vpop.permute.xlu0 %370  ;;  %v373_v39 = vpop.permute.xlu1 %372 }
  0x8b   :  { %v375_v38 = vsel %vm374_vm6, %v369_v36, %v371_v37  ;;  %v376_v41 = vsel %vm374_vm6, %v371_v37, %v373_v39  ;;  %v1041_v37 = vsub.s32 2, %v1032_v25 }
  0x8c   :  { %4004 = vmatmul.mubr.msk.bf16.vlgmr.msra.gmra.mrb[0].mxu0 %vm71_vm4, %v40_v33  ;;  %4222 = vmatmul.mubr.msk.bf16.vlgmr.msra.gmra.mrb[0].mxu1 %vm71_vm4, %v40_v33  ;;  %v389_v44 = vsel %vm75_vm2, %v376_v41, 0 }
  0x8d   :  { %283 = vmatpush1.bf16.msra.mxu0 %v274_v34  ;;  %4226 = vmatpush3.bf16.msra.mxu1 %v280_v35 }
  0x8e   :  { %314 = vmatprep.mubr.bf16.mxu0 %v4733_v7  ;;  %4227 = vmatprep.mubr.msk.bf16.mxu1 %vm4734_vm0, %v4732_v6  ;;  %v576_v45 = vpop.permute.xlu0 %575  ;;  %v578_v47 = vpop.permute.xlu1 %577 }
  0x8f   :  { %4011 = vmatprep.subr.msk.bf16.mxu0 %vm75_vm2, %v375_v38  ;;  %4231 = vmatprep.subr.bf16.mxu1 %v4732_v6  ;;  %v582_v53 = vsel %vm581_vm7, %v576_v45, %v578_v47 }
  0x90   :  { %v591_v58 = vsel %vm75_vm2, %v582_v53, 0 }
  0x92   :  { %v580_v48 = vpop.permute.xlu0 %579  ;;  %v685_v52 = vpop.permute.xlu1 %684 }
  0x93   :  { %v583_v51 = vsel %vm581_vm7, %v578_v47, %v580_v48  ;;  %v586_v54 = vsel %vm581_vm7, %v580_v48, 0  ;;  %v5006_v47 = vrot.slane %v31_v32, %v1037_v31 }
  0x94   :  { %v596_v59 = vsel %vm75_vm2, %v586_v54, 0 }
  0x96   :  { %v689_v56 = vpop.permute.xlu1 %688  ;;  %v687_v57 = vpop.permute.xlu0 %686 }
  0x97   :  { %v692_v60 = vsel %vm690_vm8, %v687_v57, %v689_v56  ;;  %v695_v62 = vsel %vm690_vm8, %v689_v56, 0  ;;  %v691_v63 = vsel %vm690_vm8, %v685_v52, %v687_v57 }
  0x98   :  { %4008 = vmatmul.mubr.msk.bf16.vlgmr.msra.gmra.mrb[0].mxu0 %vm71_vm4, %v4006_v42  ;;  %4228 = vmatmul.mubr.msk.bf16.vlgmr.msra.gmra.mrb[0].mxu1 %vm71_vm4, %v4006_v42  ;;  %v705_v3 = vsel %vm75_vm2, %v695_v62, 0  ;;  %v4070_v62 = vld [vmem:[%s5642_s0 + $0x14] sm:$0xf] }
  0x99   :  { %392 = vmatpush1.bf16.msra.mxu0 %v383_v43  ;;  %4232 = vmatpush3.bf16.msra.mxu1 %v389_v44  ;;  %v5004_v43 = vrot.slane %v31_v32, %v1033_v27  ;;  %v1052_v27 = vld [vmem:[%s5646_s4] sm:$0x3] }
  0x9a   :  { %423 = vmatprep.mubr.bf16.mxu0 %v4733_v7  ;;  %4233 = vmatprep.mubr.msk.bf16.mxu1 %vm4734_vm0, %v4732_v6  ;;  %v794_v61 = vpop.permute.xlu0 %793  ;;  %v796_v1 = vpop.permute.xlu1 %795 }
  0x9b   :  { %4015 = vmatprep.subr.msk.bf16.mxu0 %vm75_vm2, %v4808_v5  ;;  %4237 = vmatprep.subr.bf16.mxu1 %v4732_v6  ;;  %v700_v5 = vsel %vm75_vm2, %v691_v63, 0  ;;  %v800_v10 = vsel %vm799_vm9, %v794_v61, %v796_v1  ;;  %v5083_v63 = vpack.c.bf16 %v4070_v62, %v4070_v62 }
  0x9c   :  { %v809_v15 = vsel %vm75_vm2, %v800_v10, 0 }
  0x9e   :  { %v798_v2 = vpop.permute.xlu0 %797  ;;  %v903_v9 = vpop.permute.xlu1 %902 }
  0x9f   :  { %v801_v8 = vsel %vm799_vm9, %v796_v1, %v798_v2  ;;  %v804_v11 = vsel %vm799_vm9, %v798_v2, 0  ;;  %v2992_v1 = vld [vmem:[%s5645_s3] sm:$0xf] }
  0xa0   :  { %v814_v16 = vsel %vm75_vm2, %v804_v11, 0  ;;  %v4034_v11 = vld [vmem:[%s5646_s4 + $0x2] sm:$0x3] }
  0xa2   :  { %v907_v13 = vpop.permute.xlu1 %906  ;;  %v905_v14 = vpop.permute.xlu0 %904 }
  0xa3   :  { %v910_v17 = vsel %vm908_vm10, %v905_v14, %v907_v13  ;;  %v913_v18 = vsel %vm908_vm10, %v907_v13, 0  ;;  %v909_v19 = vsel %vm908_vm10, %v903_v9, %v905_v14 }
  0xa4   :  { %4012 = vmatmul.mubr.msk.bf16.vlgmr.msra.gmra.mrb[0].mxu0 %vm71_vm4, %v4010_v46  ;;  %4234 = vmatmul.mubr.msk.bf16.vlgmr.msra.gmra.mrb[0].mxu1 %vm71_vm4, %v4010_v46  ;;  %v923_v21 = vsel %vm75_vm2, %v913_v18, 0  ;;  %v918_v22 = vsel %vm75_vm2, %v909_v19, 0 }
  0xa5   :  { %490 = vmatpush1.bf16.msra.mxu0 %v481_v49  ;;  %4238 = vmatpush3.bf16.msra.mxu1 %v487_v50  ;;  %v5008_v50 = vrot.slane %v31_v32, %v1041_v37 }
  0xa6   :  { %521 = vmatprep.mubr.bf16.mxu0 %v4733_v7  ;;  %4239 = vmatprep.mubr.msk.bf16.mxu1 %vm4734_vm0, %v4732_v6 }
  0xa7   :  { %4019 = vmatprep.subr.msk.bf16.mxu0 %vm75_vm2, %v583_v51  ;;  %4243 = vmatprep.subr.bf16.mxu1 %v4732_v6 }
  0xb0   :  { %4016 = vmatmul.mubr.msk.bf16.vlgmr.msra.gmra.mrb[0].mxu0 %vm71_vm4, %v4014_v55  ;;  %4240 = vmatmul.mubr.msk.bf16.vlgmr.msra.gmra.mrb[0].mxu1 %vm71_vm4, %v4014_v55 }
  0xb1   :  { %599 = vmatpush1.bf16.msra.mxu0 %v591_v58  ;;  %4244 = vmatpush3.bf16.msra.mxu1 %v596_v59  ;;  %v4069_v58 = vld [vmem:[%s5642_s0 + $0xc] sm:$0xff] }
  0xb2   :  { %630 = vmatprep.mubr.bf16.mxu0 %v4733_v7  ;;  %4245 = vmatprep.mubr.msk.bf16.mxu1 %vm4734_vm0, %v4732_v6  ;;  %v5066_v59 = vcombine.high %v4069_v58, %v4069_v58 }
  0xb3   :  { %4023 = vmatprep.subr.msk.bf16.mxu0 %vm75_vm2, %v692_v60  ;;  %4249 = vmatprep.subr.bf16.mxu1 %v4732_v6  ;;  %v1013_v26 = vpop.permute.xlu0 %1012  ;;  %v1022_v28 = vpop.permute.xlu1 %1021  ;;  %v5070_v60 = vpack.c.bf16 %v4069_v58, %v4069_v58 }
  0xb4   :  { %v5076_v61 = vpack.c.bf16 %v5066_v59, %v5066_v59 }
  0xbc   :  { %4020 = vmatmul.mubr.msk.bf16.vlgmr.msra.gmra.mrb[0].mxu0 %vm71_vm4, %v4018_v0  ;;  %4246 = vmatmul.mubr.msk.bf16.vlgmr.msra.gmra.mrb[0].mxu1 %vm71_vm4, %v4018_v0  ;;  %v2983_v0 = vld [vmem:[%s5644_s2] sm:$0xf] }
  0xbd   :  { %708 = vmatpush1.bf16.msra.mxu0 %v700_v5  ;;  %4250 = vmatpush3.bf16.msra.mxu1 %v705_v3 }
  0xbe   :  { %739 = vmatprep.mubr.bf16.mxu0 %v4733_v7  ;;  %4251 = vmatprep.mubr.msk.bf16.mxu1 %vm4734_vm0, %v4732_v6 }
  0xbf   :  { %4027 = vmatprep.subr.msk.bf16.mxu0 %vm75_vm2, %v801_v8  ;;  %4255 = vmatprep.subr.bf16.mxu1 %v4732_v6 }
  0xc8   :  { %4024 = vmatmul.mubr.msk.bf16.vlgmr.msra.gmra.mrb[0].mxu0 %vm71_vm4, %v4022_v12  ;;  %4252 = vmatmul.mubr.msk.bf16.vlgmr.msra.gmra.mrb[0].mxu1 %vm71_vm4, %v4022_v12 }
  0xc9   :  { %817 = vmatpush1.bf16.msra.mxu0 %v809_v15  ;;  %4256 = vmatpush3.bf16.msra.mxu1 %v814_v16 }
  0xca   :  { %848 = vmatprep.mubr.bf16.mxu0 %v4733_v7  ;;  %4257 = vmatprep.mubr.msk.bf16.mxu1 %vm4734_vm0, %v4732_v6 }
  0xcb   :  { %4031 = vmatprep.subr.msk.bf16.mxu0 %vm75_vm2, %v910_v17  ;;  %4261 = vmatprep.subr.bf16.mxu1 %v4732_v6 }
  0xd4   :  { %4028 = vmatmul.mubr.msk.bf16.vlgmr.msra.gmra.mrb[0].mxu0 %vm71_vm4, %v4026_v20  ;;  %4258 = vmatmul.mubr.msk.bf16.vlgmr.msra.gmra.mrb[0].mxu1 %vm71_vm4, %v4026_v20 }
  0xd5   :  { %926 = vmatpush1.bf16.msra.mxu0 %v918_v22  ;;  %4262 = vmatpush3.bf16.msra.mxu1 %v923_v21 }
  0xd6   :  { %957 = vmatprep.mubr.bf16.mxu0 %v4733_v7  ;;  %4263 = vmatprep.mubr.msk.bf16.mxu1 %vm4734_vm0, %v4732_v6 }
  0xd7   :  { %4267 = vmatprep.subr.bf16.mxu1 %v4732_v6 }
  0xe0   :  { %4032 = vmatmul.mubr.msk.bf16.vlgmr.msra.gmra.mrb[0].mxu0 %vm71_vm4, %v4030_v23  ;;  %4264 = vmatmul.mubr.msk.bf16.vlgmr.msra.gmra.mrb[0].mxu1 %vm71_vm4, %v4030_v23 }
  0xe1   :  { %1121 = vmatprep.mubr.bf16.mxu0 %v4733_v7  ;;  %4269 = vmatprep.mubr.msk.bf16.mxu1 %vm4734_vm0, %v4732_v6 }
 0x1b3   :  { %v959_v29 = vpop.f32.mrb[0].mxu0  ;;  %v1000_v30 = vpop.f32.mrb[0].mxu1 }
 0x1b4   :  { %v1015_v33 = vmul.f32 %v1013_v26, %v959_v29  ;;  %v1017_v34 = vmul.f32 %v1013_v26, %v1000_v30  ;;  %v961_v35 = vpop.f32.mrb[1].mxu0  ;;  %v4265_v36 = vpop.f32.mrb[1].mxu1 }
 0x1b5   :  { %v1016_v38 = vmul.f32 %v1013_v26, %v961_v35  ;;  %v963_v39 = vpop.f32.mrb[2].mxu0  ;;  %v1003_v40 = vpop.f32.mrb[2].mxu1  ;;  %v4041_v36 = vld [vmem:[%s5646_s4 + $0x4] sm:$0x3] }
 0x1b6   :  { %v1024_v41 = vadd.f32 %v1022_v28, %v1015_v33  ;;  %v1026_v42 = vadd.f32 %v1022_v28, %v1017_v34  ;;  %v964_v44 = vpop.f32.mrb[3].mxu0  ;;  %v4266_v45 = vpop.f32.mrb[3].mxu1 }
 0x1b7   :  { %v1025_v46 = vadd.f32 %v1022_v28, %v1016_v38 }
 0x1b8   :  { %v1027_v48 = vmax.f32 %v1024_v41, 0.0  ;;  %v1029_v49 = vmax.f32 %v1026_v42, 0.0  ;;  %v4045_v41 = vld [vmem:[%s5646_s4 + $0x6] sm:$0x3] }
 0x1b9   :  { %v1028_v51 = vmax.f32 %v1025_v46, 0.0 }
 0x1ba   :  { %v1046_v52 = vmul.f32 %v5004_v43, %v1027_v48  ;;  %v1048_v54 = vmul.f32 %v5008_v50, %v1029_v49 }
 0x1bb   :  { %v1047_v53 = vmul.f32 %v5006_v47, %v1028_v51 }
 0x1bc   :  { %v5013_v55 = vpack.c.bf16 %v1046_v52, %v1046_v52  ;;  %v5021_v57 = vpack.c.bf16 %v1048_v54, %v1048_v54  ;;  %v4049_v52 = vld [vmem:[%s5646_s4 + $0x8] sm:$0x3] }
 0x1bd   :  { %v5015_v56 = vpack.c.bf16 %v1047_v53, %v1047_v53 }
 0x1be   :  { %1068 = vrot.lane.b32.xlu1 %v5013_v55, %s4731_s9  ;;  %v1482_v45 = vsel %vm75_vm2, %v5013_v55, 0  ;;  %v1488_v48 = vsel %vm75_vm2, %v5021_v57, 0 }
 0x1bf   :  { %1070 = vrot.lane.b32.xlu0 %v5015_v56, %s4731_s9 }
 0x1c2   :  { %1072 = vrot.lane.b32.xlu1 %v5021_v57, %s4731_s9 }
 0x1c3   :  { %1056 = vrot.lane.b32.xlu0 %v5013_v55, %s4735_s10 }
 0x1c6   :  { %1058 = vrot.lane.b32.xlu1 %v5015_v56, %s4735_s10 }
 0x1c7   :  { %1060 = vrot.lane.b32.xlu0 %v5021_v57, %s4735_s10 }
 0x1ca   :  { %1264 = vrot.lane.b32.xlu1 %v5013_v55, %s4736_s11 }
 0x1cb   :  { %1266 = vrot.lane.b32.xlu0 %v5015_v56, %s4736_s11 }
 0x1ce   :  { %1268 = vrot.lane.b32.xlu1 %v5021_v57, %s4736_s11 }
 0x1cf   :  { %1371 = vrot.lane.b32.xlu0 %v5013_v55, %s4737_s12 }
 0x1d2   :  { %1373 = vrot.lane.b32.xlu1 %v5015_v56, %s4737_s12 }
 0x1d3   :  { %1375 = vrot.lane.b32.xlu0 %v5021_v57, %s4737_s12 }
 0x1d6   :  { %1576 = vrot.lane.b32.xlu1 %v5013_v55, %s4738_s13 }
 0x1d7   :  { %1578 = vrot.lane.b32.xlu0 %v5015_v56, %s4738_s13 }
 0x1da   :  { %1580 = vrot.lane.b32.xlu1 %v5021_v57, %s4738_s13 }
 0x1db   :  { %1683 = vrot.lane.b32.xlu0 %v5013_v55, %s4739_s14 }
 0x1de   :  { %1685 = vrot.lane.b32.xlu1 %v5015_v56, %s4739_s14 }
 0x1df   :  { %1687 = vrot.lane.b32.xlu0 %v5021_v57, %s4739_s14 }
 0x1e2   :  { %1790 = vrot.lane.b32.xlu1 %v5013_v55, %s4740_s15 }
 0x1e3   :  { %1792 = vrot.lane.b32.xlu0 %v5015_v56, %s4740_s15 }
 0x1e6   :  { %1794 = vrot.lane.b32.xlu1 %v5021_v57, %s4740_s15 }
 0x1e7   :  { %1897 = vrot.lane.b32.xlu0 %v5013_v55, %s4741_s16 }
 0x1ea   :  { %1899 = vrot.lane.b32.xlu1 %v5015_v56, %s4741_s16 }
 0x1eb   :  { %1901 = vrot.lane.b32.xlu0 %v5021_v57, %s4741_s16 }
 0x1ee   :  { %2056 = vrot.lane.b32.xlu1 %v5070_v60, %s4731_s9 }
 0x1ef   :  { %2058 = vrot.lane.b32.xlu0 %v5076_v61, %s4731_s9 }
 0x1f2   :  { %2060 = vrot.lane.b32.xlu1 %v5083_v63, %s4731_s9 }
 0x1f3   :  { %2045 = vrot.lane.b32.xlu0 %v5070_v60, %s4735_s10 }
 0x1f6   :  { %2047 = vrot.lane.b32.xlu1 %v5076_v61, %s4735_s10 }
 0x1f7   :  { %2049 = vrot.lane.b32.xlu0 %v5083_v63, %s4735_s10 }
 0x1fa   :  { %2251 = vrot.lane.b32.xlu1 %v5070_v60, %s4736_s11 }
 0x1fb   :  { %2253 = vrot.lane.b32.xlu0 %v5076_v61, %s4736_s11 }
 0x1fe   :  { %2255 = vrot.lane.b32.xlu1 %v5083_v63, %s4736_s11 }
 0x1ff   :  { %2357 = vrot.lane.b32.xlu0 %v5070_v60, %s4737_s12 }
 0x202   :  { %2359 = vrot.lane.b32.xlu1 %v5076_v61, %s4737_s12 }
 0x203   :  { %2361 = vrot.lane.b32.xlu0 %v5083_v63, %s4737_s12 }
 0x206   :  { %2560 = vrot.lane.b32.xlu1 %v5070_v60, %s4738_s13 }
 0x207   :  { %2562 = vrot.lane.b32.xlu0 %v5076_v61, %s4738_s13 }
 0x20a   :  { %2564 = vrot.lane.b32.xlu1 %v5083_v63, %s4738_s13 }
 0x20b   :  { %2666 = vrot.lane.b32.xlu0 %v5070_v60, %s4739_s14 }
 0x20e   :  { %2668 = vrot.lane.b32.xlu1 %v5076_v61, %s4739_s14 }
 0x20f   :  { %2670 = vrot.lane.b32.xlu0 %v5083_v63, %s4739_s14 }
 0x212   :  { %2772 = vrot.lane.b32.xlu1 %v5070_v60, %s4740_s15 }
 0x213   :  { %2774 = vrot.lane.b32.xlu0 %v5076_v61, %s4740_s15 }
 0x216   :  { %2776 = vrot.lane.b32.xlu1 %v5083_v63, %s4740_s15 }
 0x217   :  { %2878 = vrot.lane.b32.xlu0 %v5070_v60, %s4741_s16 }
 0x21a   :  { %2880 = vrot.lane.b32.xlu1 %v5076_v61, %s4741_s16 }
 0x21b   :  { %2882 = vrot.lane.b32.xlu0 %v5083_v63, %s4741_s16 }
 0x21e   :  { %2986 = vperm.xlu1 %4700, %v2983_v0  }
 0x21f   :  { %2995 = vperm.xlu0 %4699, %v2992_v1   ;;  %v4053_v1 = vld [vmem:[%s5646_s4 + $0xa] sm:$0x3] }
 0x230   :  { %v1069_v2 = vpop.permute.xlu1 %1068 }
 0x231   :  { %v1077_v3 = vsel %vm65_vm1, 0, %v1069_v2  ;;  %v1071_v5 = vpop.permute.xlu0 %1070 }
 0x232   :  { %v1081_v8 = vsel %vm75_vm2, %v1077_v3, 0  ;;  %v1074_v9 = vsel %vm65_vm1, %v1069_v2, %v1071_v5 }
 0x233   :  { %4035 = vmatprep.subr.msk.bf16.mxu0 %vm75_vm2, %v1074_v9 }
 0x234   :  { %1090 = vmatpush1.bf16.msra.mxu0 %v1081_v8  ;;  %v1073_v10 = vpop.permute.xlu1 %1072 }
 0x235   :  { %v1075_v12 = vsel %vm65_vm1, %v1071_v5, %v1073_v10  ;;  %v1057_v13 = vpop.permute.xlu0 %1056 }
 0x236   :  { %v1087_v14 = vsel %vm75_vm2, %v1075_v12, 0  ;;  %v1065_v15 = vsel %vm50_vm3, 0, %v1057_v13 }
 0x237   :  { %4036 = vmatmul.mubr.msk.bf16.vlgmr.msra.gmra.mrb[4].mxu0 %vm71_vm4, %v4034_v11  ;;  %4268 = vmatpush3.bf16.msra.mxu1 %v1087_v14  ;;  %v1173_v19 = vsel %vm75_vm2, %v1065_v15, 0 }
 0x238   :  { %v1059_v16 = vpop.permute.xlu1 %1058  ;;  %4273 = vmatprep.subr.bf16.mxu1 %v4732_v6  ;;  %1213 = vmatprep.mubr.bf16.mxu0 %v4733_v7 }
 0x239   :  { %v1062_v17 = vsel %vm50_vm3, %v1057_v13, %v1059_v16  ;;  %v1061_v18 = vpop.permute.xlu0 %1060  ;;  %v4057_v13 = vld [vmem:[%s5646_s4 + $0xc] sm:$0x3] }
 0x23a   :  { %v1063_v20 = vsel %vm50_vm3, %v1059_v16, %v1061_v18  ;;  %4270 = vmatmul.mubr.msk.bf16.vlgmr.msra.gmra.mrb[4].mxu1 %vm71_vm4, %v4034_v11  ;;  %4038 = vmatprep.subr.msk.bf16.mxu0 %vm75_vm2, %v1062_v17 }
 0x23b   :  { %v1179_v21 = vsel %vm75_vm2, %v1063_v20, 0  ;;  %1182 = vmatpush1.bf16.msra.mxu0 %v1173_v19  ;;  %4275 = vmatprep.mubr.msk.bf16.mxu1 %vm4734_vm0, %v4732_v6 }
 0x23c   :  { %4274 = vmatpush3.bf16.msra.mxu1 %v1179_v21  ;;  %v1265_v22 = vpop.permute.xlu1 %1264  ;;  %v4061_v21 = vld [vmem:[%s5646_s4 + $0xe] sm:$0x3] }
 0x23d   :  { %v1267_v23 = vpop.permute.xlu0 %1266  ;;  %4279 = vmatprep.subr.bf16.mxu1 %v4732_v6  ;;  %v1273_v25 = vsel %vm265_vm5, 0, %v1265_v22 }
 0x23e   :  { %v1270_v24 = vsel %vm265_vm5, %v1265_v22, %v1267_v23  ;;  %v1277_v28 = vsel %vm75_vm2, %v1273_v25, 0 }
 0x23f   :  { %4042 = vmatprep.subr.msk.bf16.mxu0 %vm75_vm2, %v1270_v24 }
 0x240   :  { %v1269_v26 = vpop.permute.xlu1 %1268 }
 0x241   :  { %v1271_v29 = vsel %vm265_vm5, %v1267_v23, %v1269_v26  ;;  %v1372_v30 = vpop.permute.xlu0 %1371 }
 0x242   :  { %v1283_v33 = vsel %vm75_vm2, %v1271_v29, 0  ;;  %v1380_v34 = vsel %vm374_vm6, 0, %v1372_v30 }
 0x243   :  { %4039 = vmatmul.mubr.msk.bf16.vlgmr.msra.gmra.mrb[4].mxu0 %vm71_vm4, %v1052_v27  ;;  %v1384_v37 = vsel %vm75_vm2, %v1380_v34, 0 }
 0x244   :  { %1286 = vmatpush1.bf16.msra.mxu0 %v1277_v28  ;;  %v1374_v31 = vpop.permute.xlu1 %1373  ;;  %1317 = vmatprep.mubr.bf16.mxu0 %v4733_v7 }
 0x245   :  { %v1377_v32 = vsel %vm374_vm6, %v1372_v30, %v1374_v31  ;;  %v1376_v35 = vpop.permute.xlu0 %1375 }
 0x246   :  { %4276 = vmatmul.mubr.msk.bf16.vlgmr.msra.gmra.mrb[4].mxu1 %vm71_vm4, %v1052_v27  ;;  %4046 = vmatprep.subr.msk.bf16.mxu0 %vm75_vm2, %v1377_v32  ;;  %v1378_v38 = vsel %vm374_vm6, %v1374_v31, %v1376_v35  ;;  %v4065_v31 = vld [vmem:[%s5646_s4 + $0x10] sm:$0x3] }
 0x247   :  { %4280 = vmatpush3.bf16.msra.mxu1 %v1283_v33  ;;  %4281 = vmatprep.mubr.msk.bf16.mxu1 %vm4734_vm0, %v4732_v6  ;;  %v1390_v39 = vsel %vm75_vm2, %v1378_v38, 0 }
 0x248   :  { %4285 = vmatprep.subr.bf16.mxu1 %v4732_v6  ;;  %v1577_v40 = vpop.permute.xlu1 %1576 }
 0x249   :  { %v1579_v42 = vpop.permute.xlu0 %1578 }
 0x24a   :  { %v1582_v51 = vsel %vm581_vm7, %v1577_v40, %v1579_v42 }
 0x24b   :  { %v1590_v55 = vsel %vm75_vm2, %v1582_v51, 0  ;;  %v2041_v51 = vld [vmem:[%s5643_s1] sm:$0x3] }
 0x24c   :  { %v1581_v44 = vpop.permute.xlu1 %1580 }
 0x24d   :  { %v1583_v46 = vsel %vm581_vm7, %v1579_v42, %v1581_v44  ;;  %v1684_v49 = vpop.permute.xlu0 %1683 }
 0x24f   :  { %4043 = vmatmul.mubr.msk.bf16.vlgmr.msra.gmra.mrb[4].mxu0 %vm71_vm4, %v4041_v36 }
 0x250   :  { %1393 = vmatpush1.bf16.msra.mxu0 %v1384_v37  ;;  %1424 = vmatprep.mubr.bf16.mxu0 %v4733_v7  ;;  %v1686_v53 = vpop.permute.xlu1 %1685 }
 0x251   :  { %4050 = vmatprep.subr.msk.bf16.mxu0 %vm75_vm2, %v5015_v56  ;;  %v1688_v54 = vpop.permute.xlu0 %1687  ;;  %v1585_v56 = vsel %vm581_vm7, %v1581_v44, 0  ;;  %v1689_v0 = vsel %vm690_vm8, %v1684_v49, %v1686_v53 }
 0x252   :  { %4282 = vmatmul.mubr.msk.bf16.vlgmr.msra.gmra.mrb[4].mxu1 %vm71_vm4, %v4041_v36  ;;  %v1690_v57 = vsel %vm690_vm8, %v1686_v53, %v1688_v54  ;;  %v1595_v58 = vsel %vm75_vm2, %v1585_v56, 0  ;;  %v1697_v5 = vsel %vm75_vm2, %v1689_v0, 0  ;;  %v1692_v8 = vsel %vm690_vm8, %v1688_v54, 0  ;;  %v4078_v0 = vld [vmem:[%s5643_s1 + $0x4] sm:$0x3] }
 0x253   :  { %4286 = vmatpush3.bf16.msra.mxu1 %v1390_v39  ;;  %4287 = vmatprep.mubr.msk.bf16.mxu1 %vm4734_vm0, %v4732_v6  ;;  %v1702_v10 = vsel %vm75_vm2, %v1692_v8, 0  ;;  %v4071_v39 = vld [vmem:[%s5643_s1 + $0x2] sm:$0x3]  ;;  %v4082_v8 = vld [vmem:[%s5643_s1 + $0x6] sm:$0x3] }
 0x254   :  { %4291 = vmatprep.subr.bf16.mxu1 %v4732_v6  ;;  %v1791_v62 = vpop.permute.xlu1 %1790 }
 0x255   :  { %v1793_v2 = vpop.permute.xlu0 %1792 }
 0x256   :  { %v1796_v12 = vsel %vm799_vm9, %v1791_v62, %v1793_v2 }
 0x257   :  { %v1804_v16 = vsel %vm75_vm2, %v1796_v12, 0  ;;  %v2473_v12 = vsel %vm75_vm2, %v5083_v63, 0 }
 0x258   :  { %v1795_v3 = vpop.permute.xlu1 %1794 }
 0x259   :  { %v1797_v9 = vsel %vm799_vm9, %v1793_v2, %v1795_v3  ;;  %v1898_v11 = vpop.permute.xlu0 %1897  ;;  %v1799_v17 = vsel %vm799_vm9, %v1795_v3, 0 }
 0x25a   :  { %v1809_v19 = vsel %vm75_vm2, %v1799_v17, 0 }
 0x25b   :  { %4047 = vmatmul.mubr.msk.bf16.vlgmr.msra.gmra.mrb[4].mxu0 %vm71_vm4, %v4045_v41 }
 0x25c   :  { %1491 = vmatpush1.bf16.msra.mxu0 %v1482_v45  ;;  %1522 = vmatprep.mubr.bf16.mxu0 %v4733_v7  ;;  %v1900_v14 = vpop.permute.xlu1 %1899 }
 0x25d   :  { %4054 = vmatprep.subr.msk.bf16.mxu0 %vm75_vm2, %v1583_v46  ;;  %v1902_v15 = vpop.permute.xlu0 %1901  ;;  %v1903_v20 = vsel %vm908_vm10, %v1898_v11, %v1900_v14  ;;  %v2467_v11 = vsel %vm75_vm2, %v5070_v60, 0 }
 0x25e   :  { %4288 = vmatmul.mubr.msk.bf16.vlgmr.msra.gmra.mrb[4].mxu1 %vm71_vm4, %v4045_v41  ;;  %v1904_v18 = vsel %vm908_vm10, %v1900_v14, %v1902_v15  ;;  %v1911_v25 = vsel %vm75_vm2, %v1903_v20, 0  ;;  %v1906_v26 = vsel %vm908_vm10, %v1902_v15, 0  ;;  %v4086_v14 = vld [vmem:[%s5643_s1 + $0x8] sm:$0x3] }
 0x25f   :  { %4292 = vmatpush3.bf16.msra.mxu1 %v1488_v48  ;;  %4293 = vmatprep.mubr.msk.bf16.mxu1 %vm4734_vm0, %v4732_v6  ;;  %v1916_v27 = vsel %vm75_vm2, %v1906_v26, 0 }
 0x260   :  { %4297 = vmatprep.subr.bf16.mxu1 %v4732_v6  ;;  %v2057_v22 = vpop.permute.xlu1 %2056 }
 0x261   :  { %v2059_v23 = vpop.permute.xlu0 %2058  ;;  %v2065_v30 = vsel %vm65_vm1, 0, %v2057_v22 }
 0x262   :  { %v2062_v24 = vsel %vm65_vm1, %v2057_v22, %v2059_v23  ;;  %v2069_v32 = vsel %vm75_vm2, %v2065_v30, 0  ;;  %v4090_v22 = vld [vmem:[%s5643_s1 + $0xa] sm:$0x3] }
 0x264   :  { %v2061_v28 = vpop.permute.xlu1 %2060 }
 0x265   :  { %v2046_v29 = vpop.permute.xlu0 %2045  ;;  %v2063_v33 = vsel %vm65_vm1, %v2059_v23, %v2061_v28 }
 0x266   :  { %v2075_v37 = vsel %vm75_vm2, %v2063_v33, 0  ;;  %v2054_v38 = vsel %vm50_vm3, 0, %v2046_v29 }
 0x267   :  { %4051 = vmatmul.mubr.msk.bf16.vlgmr.msra.gmra.mrb[4].mxu0 %vm71_vm4, %v4049_v52  ;;  %v2161_v40 = vsel %vm75_vm2, %v2054_v38, 0 }
 0x268   :  { %1598 = vmatpush1.bf16.msra.mxu0 %v1590_v55  ;;  %1629 = vmatprep.mubr.bf16.mxu0 %v4733_v7  ;;  %v2048_v34 = vpop.permute.xlu1 %2047 }
 0x269   :  { %4058 = vmatprep.subr.msk.bf16.mxu0 %vm75_vm2, %v1690_v57  ;;  %v2051_v35 = vsel %vm50_vm3, %v2046_v29, %v2048_v34  ;;  %v2050_v36 = vpop.permute.xlu0 %2049 }
 0x26a   :  { %4294 = vmatmul.mubr.msk.bf16.vlgmr.msra.gmra.mrb[4].mxu1 %vm71_vm4, %v4049_v52  ;;  %v2052_v41 = vsel %vm50_vm3, %v2048_v34, %v2050_v36 }
 0x26b   :  { %4298 = vmatpush3.bf16.msra.mxu1 %v1595_v58  ;;  %4299 = vmatprep.mubr.msk.bf16.mxu1 %vm4734_vm0, %v4732_v6  ;;  %v2167_v46 = vsel %vm75_vm2, %v2052_v41, 0 }
 0x26c   :  { %4303 = vmatprep.subr.bf16.mxu1 %v4732_v6  ;;  %v2252_v42 = vpop.permute.xlu1 %2251 }
 0x26d   :  { %v2254_v44 = vpop.permute.xlu0 %2253  ;;  %v2260_v49 = vsel %vm265_vm5, 0, %v2252_v42 }
 0x26e   :  { %v2257_v45 = vsel %vm265_vm5, %v2252_v42, %v2254_v44  ;;  %v2264_v52 = vsel %vm75_vm2, %v2260_v49, 0 }
 0x270   :  { %v2256_v48 = vpop.permute.xlu1 %2255 }
 0x271   :  { %v2258_v53 = vsel %vm265_vm5, %v2254_v44, %v2256_v48  ;;  %v2358_v54 = vpop.permute.xlu0 %2357  ;;  %v4102_v44 = vld [vmem:[%s5643_s1 + $0x10] sm:$0x3] }
 0x272   :  { %v2270_v57 = vsel %vm75_vm2, %v2258_v53, 0  ;;  %v2366_v58 = vsel %vm374_vm6, 0, %v2358_v54 }
 0x273   :  { %4055 = vmatmul.mubr.msk.bf16.vlgmr.msra.gmra.mrb[4].mxu0 %vm71_vm4, %v4053_v1 }
 0x274   :  { %1705 = vmatpush1.bf16.msra.mxu0 %v1697_v5  ;;  %1736 = vmatprep.mubr.bf16.mxu0 %v4733_v7  ;;  %v2360_v55 = vpop.permute.xlu1 %2359 }
 0x275   :  { %4062 = vmatprep.subr.msk.bf16.mxu0 %vm75_vm2, %v1797_v9  ;;  %v2363_v56 = vsel %vm374_vm6, %v2358_v54, %v2360_v55  ;;  %v2362_v62 = vpop.permute.xlu0 %2361 }
 0x276   :  { %4300 = vmatmul.mubr.msk.bf16.vlgmr.msra.gmra.mrb[4].mxu1 %vm71_vm4, %v4053_v1  ;;  %v2370_v1 = vsel %vm75_vm2, %v2366_v58, 0  ;;  %v2364_v2 = vsel %vm374_vm6, %v2360_v55, %v2362_v62 }
 0x277   :  { %4304 = vmatpush3.bf16.msra.mxu1 %v1702_v10  ;;  %4305 = vmatprep.mubr.msk.bf16.mxu1 %vm4734_vm0, %v4732_v6  ;;  %v2376_v3 = vsel %vm75_vm2, %v2364_v2, 0 }
 0x278   :  { %4309 = vmatprep.subr.bf16.mxu1 %v4732_v6  ;;  %v2561_v5 = vpop.permute.xlu1 %2560 }
 0x279   :  { %v2563_v9 = vpop.permute.xlu0 %2562 }
 0x27a   :  { %v2566_v60 = vsel %vm581_vm7, %v2561_v5, %v2563_v9 }
 0x27b   :  { %v2574_v63 = vsel %vm75_vm2, %v2566_v60, 0 }
 0x27c   :  { %v2565_v10 = vpop.permute.xlu1 %2564 }
 0x27d   :  { %v2569_v15 = vsel %vm581_vm7, %v2565_v10, 0 }
 0x27f   :  { %4059 = vmatmul.mubr.msk.bf16.vlgmr.msra.gmra.mrb[4].mxu0 %vm71_vm4, %v4057_v13 }
 0x280   :  { %1812 = vmatpush1.bf16.msra.mxu0 %v1804_v16  ;;  %1843 = vmatprep.mubr.bf16.mxu0 %v4733_v7  ;;  %v2669_v16 = vpop.permute.xlu1 %2668 }
 0x281   :  { %4066 = vmatprep.subr.msk.bf16.mxu0 %vm75_vm2, %v1904_v18 }
 0x282   :  { %4306 = vmatmul.mubr.msk.bf16.vlgmr.msra.gmra.mrb[4].mxu1 %vm71_vm4, %v4057_v13  ;;  %v2667_v13 = vpop.permute.xlu0 %2666 }
 0x283   :  { %4310 = vmatpush3.bf16.msra.mxu1 %v1809_v19  ;;  %4311 = vmatprep.mubr.msk.bf16.mxu1 %vm4734_vm0, %v4732_v6  ;;  %v2579_v19 = vsel %vm75_vm2, %v2569_v15, 0 }
 0x284   :  { %4315 = vmatprep.subr.bf16.mxu1 %v4732_v6  ;;  %v2773_v20 = vpop.permute.xlu1 %2772 }
 0x286   :  { %v2671_v17 = vpop.permute.xlu0 %2670 }
 0x287   :  { %v2673_v18 = vsel %vm690_vm8, %v2669_v16, %v2671_v17 }
 0x288   :  { %v2777_v26 = vpop.permute.xlu1 %2776 }
 0x289   :  { %v2781_v33 = vsel %vm799_vm9, %v2777_v26, 0 }
 0x28b   :  { %4063 = vmatmul.mubr.msk.bf16.vlgmr.msra.gmra.mrb[4].mxu0 %vm71_vm4, %v4061_v21 }
 0x28c   :  { %1919 = vmatpush1.bf16.msra.mxu0 %v1911_v25  ;;  %1950 = vmatprep.mubr.bf16.mxu0 %v4733_v7  ;;  %v2775_v25 = vpop.permute.xlu0 %2774  ;;  %v2881_v34 = vpop.permute.xlu1 %2880 }
 0x28d   :  { %4072 = vmatprep.subr.msk.bf16.mxu0 %vm75_vm2, %v2062_v24  ;;  %v2675_v24 = vsel %vm690_vm8, %v2671_v17, 0  ;;  %v2778_v30 = vsel %vm799_vm9, %v2773_v20, %v2775_v25  ;;  %v3961_v20 = vld [vmem:[%s5648_s6] sm:$0xf] }
 0x28e   :  { %4312 = vmatmul.mubr.msk.bf16.vlgmr.msra.gmra.mrb[4].mxu1 %vm71_vm4, %v4061_v21  ;;  %v2672_v21 = vsel %vm690_vm8, %v2667_v13, %v2669_v16  ;;  %v2685_v28 = vsel %vm75_vm2, %v2675_v24, 0 }
 0x28f   :  { %4316 = vmatpush3.bf16.msra.mxu1 %v1916_v27  ;;  %4317 = vmatprep.mubr.msk.bf16.mxu1 %vm4734_vm0, %v4732_v6  ;;  %v2680_v23 = vsel %vm75_vm2, %v2672_v21, 0  ;;  %v2779_v27 = vsel %vm799_vm9, %v2775_v25, %v2777_v26 }
 0x290   :  { %4321 = vmatprep.subr.bf16.mxu1 %v4732_v6  ;;  %v2879_v29 = vpop.permute.xlu0 %2878 }
 0x291   :  { %v2884_v38 = vsel %vm908_vm10, %v2879_v29, %v2881_v34 }
 0x297   :  { %4067 = vmatmul.mubr.msk.bf16.vlgmr.msra.gmra.mrb[4].mxu0 %vm71_vm4, %v4065_v31 }
 0x298   :  { %2078 = vmatpush1.bf16.msra.mxu0 %v2069_v32  ;;  %2109 = vmatprep.mubr.bf16.mxu0 %v4733_v7  ;;  %v2786_v32 = vsel %vm75_vm2, %v2778_v30, 0 }
 0x299   :  { %4075 = vmatprep.subr.msk.bf16.mxu0 %vm75_vm2, %v2051_v35  ;;  %v2883_v35 = vpop.permute.xlu0 %2882 }
 0x29a   :  { %4318 = vmatmul.mubr.msk.bf16.vlgmr.msra.gmra.mrb[4].mxu1 %vm71_vm4, %v4065_v31  ;;  %v4094_v31 = vld [vmem:[%s5643_s1 + $0xc] sm:$0x3]  ;;  %v2885_v36 = vsel %vm908_vm10, %v2881_v34, %v2883_v35  ;;  %v2887_v41 = vsel %vm908_vm10, %v2883_v35, 0 }
 0x29b   :  { %4322 = vmatpush3.bf16.msra.mxu1 %v2075_v37  ;;  %4323 = vmatprep.mubr.msk.bf16.mxu1 %vm4734_vm0, %v4732_v6  ;;  %v2791_v37 = vsel %vm75_vm2, %v2781_v33, 0  ;;  %v2897_v42 = vsel %vm75_vm2, %v2887_v41, 0 }
 0x29c   :  { %4327 = vmatprep.subr.bf16.mxu1 %v4732_v6 }
 0x29d   :  { %v2987_v55 = vpop.permute.xlu1 %2986 }
 0x29e   :  { %v2996_v62 = vpop.permute.xlu0 %2995 }
 0x29f   :  { %4073 = vmatmul.mubr.msk.bf16.vlgmr.msra.gmra.mrb[8].mxu0 %vm71_vm4, %v4071_v39 }
 0x2a0   :  { %2170 = vmatpush1.bf16.msra.mxu0 %v2161_v40  ;;  %2201 = vmatprep.mubr.bf16.mxu0 %v4733_v7  ;;  %v2892_v40 = vsel %vm75_vm2, %v2884_v38, 0 }
 0x2a1   :  { %4079 = vmatprep.subr.msk.bf16.mxu0 %vm75_vm2, %v2257_v45 }
 0x2a2   :  { %4324 = vmatmul.mubr.msk.bf16.vlgmr.msra.gmra.mrb[8].mxu1 %vm71_vm4, %v4071_v39  ;;  %v4098_v39 = vld [vmem:[%s5643_s1 + $0xe] sm:$0x3] }
 0x2a3   :  { %4328 = vmatpush3.bf16.msra.mxu1 %v2167_v46  ;;  %4329 = vmatprep.mubr.msk.bf16.mxu1 %vm4734_vm0, %v4732_v6 }
 0x2a4   :  { %4333 = vmatprep.subr.bf16.mxu1 %v4732_v6 }
 0x2ab   :  { %4076 = vmatmul.mubr.msk.bf16.vlgmr.msra.gmra.mrb[8].mxu0 %vm71_vm4, %v2041_v51 }
 0x2ac   :  { %2273 = vmatpush1.bf16.msra.mxu0 %v2264_v52  ;;  %2304 = vmatprep.mubr.bf16.mxu0 %v4733_v7 }
 0x2ad   :  { %4083 = vmatprep.subr.msk.bf16.mxu0 %vm75_vm2, %v2363_v56 }
 0x2ae   :  { %4330 = vmatmul.mubr.msk.bf16.vlgmr.msra.gmra.mrb[8].mxu1 %vm71_vm4, %v2041_v51 }
 0x2af   :  { %4334 = vmatpush3.bf16.msra.mxu1 %v2270_v57  ;;  %4335 = vmatprep.mubr.msk.bf16.mxu1 %vm4734_vm0, %v4732_v6 }
 0x2b0   :  { %4339 = vmatprep.subr.bf16.mxu1 %v4732_v6 }
 0x2b7   :  { %4080 = vmatmul.mubr.msk.bf16.vlgmr.msra.gmra.mrb[8].mxu0 %vm71_vm4, %v4078_v0 }
 0x2b8   :  { %2379 = vmatpush1.bf16.msra.mxu0 %v2370_v1  ;;  %2410 = vmatprep.mubr.bf16.mxu0 %v4733_v7 }
 0x2b9   :  { %4087 = vmatprep.subr.msk.bf16.mxu0 %vm75_vm2, %v5076_v61  ;;  %v2567_v61 = vsel %vm581_vm7, %v2563_v9, %v2565_v10 }
 0x2ba   :  { %4336 = vmatmul.mubr.msk.bf16.vlgmr.msra.gmra.mrb[8].mxu1 %vm71_vm4, %v4078_v0 }
 0x2bb   :  { %4340 = vmatpush3.bf16.msra.mxu1 %v2376_v3  ;;  %4341 = vmatprep.mubr.msk.bf16.mxu1 %vm4734_vm0, %v4732_v6 }
 0x2bc   :  { %4345 = vmatprep.subr.bf16.mxu1 %v4732_v6 }
 0x2c3   :  { %4084 = vmatmul.mubr.msk.bf16.vlgmr.msra.gmra.mrb[8].mxu0 %vm71_vm4, %v4082_v8 }
 0x2c4   :  { %2476 = vmatpush1.bf16.msra.mxu0 %v2467_v11  ;;  %2507 = vmatprep.mubr.bf16.mxu0 %v4733_v7 }
 0x2c5   :  { %4091 = vmatprep.subr.msk.bf16.mxu0 %vm75_vm2, %v2567_v61 }
 0x2c6   :  { %4342 = vmatmul.mubr.msk.bf16.vlgmr.msra.gmra.mrb[8].mxu1 %vm71_vm4, %v4082_v8 }
 0x2c7   :  { %4346 = vmatpush3.bf16.msra.mxu1 %v2473_v12  ;;  %4347 = vmatprep.mubr.msk.bf16.mxu1 %vm4734_vm0, %v4732_v6 }
 0x2c8   :  { %4351 = vmatprep.subr.bf16.mxu1 %v4732_v6 }
 0x2cf   :  { %4088 = vmatmul.mubr.msk.bf16.vlgmr.msra.gmra.mrb[8].mxu0 %vm71_vm4, %v4086_v14 }
 0x2d0   :  { %2582 = vmatpush1.bf16.msra.mxu0 %v2574_v63  ;;  %2613 = vmatprep.mubr.bf16.mxu0 %v4733_v7 }
 0x2d1   :  { %4095 = vmatprep.subr.msk.bf16.mxu0 %vm75_vm2, %v2673_v18 }
 0x2d2   :  { %4348 = vmatmul.mubr.msk.bf16.vlgmr.msra.gmra.mrb[8].mxu1 %vm71_vm4, %v4086_v14 }
 0x2d3   :  { %4352 = vmatpush3.bf16.msra.mxu1 %v2579_v19  ;;  %4353 = vmatprep.mubr.msk.bf16.mxu1 %vm4734_vm0, %v4732_v6 }
 0x2d4   :  { %4357 = vmatprep.subr.bf16.mxu1 %v4732_v6 }
 0x2db   :  { %4092 = vmatmul.mubr.msk.bf16.vlgmr.msra.gmra.mrb[8].mxu0 %vm71_vm4, %v4090_v22 }
 0x2dc   :  { %2688 = vmatpush1.bf16.msra.mxu0 %v2680_v23  ;;  %2719 = vmatprep.mubr.bf16.mxu0 %v4733_v7 }
 0x2dd   :  { %4099 = vmatprep.subr.msk.bf16.mxu0 %vm75_vm2, %v2779_v27  ;;  %v4106_v27 = vld [vmem:[%s5646_s4 + $0x2] sm:$0x3] }
 0x2de   :  { %4354 = vmatmul.mubr.msk.bf16.vlgmr.msra.gmra.mrb[8].mxu1 %vm71_vm4, %v4090_v22 }
 0x2df   :  { %4358 = vmatpush3.bf16.msra.mxu1 %v2685_v28  ;;  %4359 = vmatprep.mubr.msk.bf16.mxu1 %vm4734_vm0, %v4732_v6 }
 0x2e0   :  { %4363 = vmatprep.subr.bf16.mxu1 %v4732_v6 }
 0x2e7   :  { %4096 = vmatmul.mubr.msk.bf16.vlgmr.msra.gmra.mrb[8].mxu0 %vm71_vm4, %v4094_v31 }
 0x2e8   :  { %2794 = vmatpush1.bf16.msra.mxu0 %v2786_v32  ;;  %2825 = vmatprep.mubr.bf16.mxu0 %v4733_v7 }
 0x2e9   :  { %4103 = vmatprep.subr.msk.bf16.mxu0 %vm75_vm2, %v2885_v36 }
 0x2ea   :  { %4360 = vmatmul.mubr.msk.bf16.vlgmr.msra.gmra.mrb[8].mxu1 %vm71_vm4, %v4094_v31 }
 0x2eb   :  { %4364 = vmatpush3.bf16.msra.mxu1 %v2791_v37  ;;  %4365 = vmatprep.mubr.msk.bf16.mxu1 %vm4734_vm0, %v4732_v6 }
 0x2ec   :  { %4369 = vmatprep.subr.bf16.mxu1 %v4732_v6 }
 0x2f3   :  { %4100 = vmatmul.mubr.msk.bf16.vlgmr.msra.gmra.mrb[8].mxu0 %vm71_vm4, %v4098_v39 }
 0x2f4   :  { %2900 = vmatpush1.bf16.msra.mxu0 %v2892_v40  ;;  %2931 = vmatprep.mubr.bf16.mxu0 %v4733_v7 }
 0x2f6   :  { %4366 = vmatmul.mubr.msk.bf16.vlgmr.msra.gmra.mrb[8].mxu1 %vm71_vm4, %v4098_v39 }
 0x2f7   :  { %4370 = vmatpush3.bf16.msra.mxu1 %v2897_v42  ;;  %4371 = vmatprep.mubr.msk.bf16.mxu1 %vm4734_vm0, %v4732_v6 }
 0x2f8   :  { %4375 = vmatprep.subr.bf16.mxu1 %v4732_v6 }
 0x2ff   :  { %4104 = vmatmul.mubr.msk.bf16.vlgmr.msra.gmra.mrb[8].mxu0 %vm71_vm4, %v4102_v44 }
 0x300   :  { %3078 = vmatprep.mubr.bf16.mxu0 %v4733_v7 }
 0x302   :  { %4372 = vmatmul.mubr.msk.bf16.vlgmr.msra.gmra.mrb[8].mxu1 %vm71_vm4, %v4102_v44  ;;  %v3010_v44 = vld [vmem:[%s5646_s4] sm:$0x3] }
 0x303   :  { %4377 = vmatprep.mubr.msk.bf16.mxu1 %vm4734_vm0, %v4732_v6 }
 0x36a   :  { %v5407_v45 = vpop.f32.mrb[4].mxu0 }
 0x36b   :  { %v5409_v46 = vpop.f32.mrb[5].mxu0 }
 0x36c   :  { %v1956_v48 = vpop.f32.mrb[6].mxu0 }
 0x36d   :  { %v1957_v49 = vpop.f32.mrb[7].mxu0  ;;  %v5411_v51 = vpop.f32.mrb[4].mxu1 }
 0x36e   :  { %v4319_v52 = vpop.f32.mrb[5].mxu1 }
 0x36f   :  { %v1996_v53 = vpop.f32.mrb[6].mxu1 }
 0x370   :  { %v4320_v54 = vpop.f32.mrb[7].mxu1 }
 0x3d2   :  { %v2933_v56 = vpop.f32.mrb[8].mxu0 }
 0x3d3   :  { %v2989_v57 = vmul.f32 %v2987_v55, %v2933_v56  ;;  %v2935_v58 = vpop.f32.mrb[9].mxu0 }
 0x3d4   :  { %v2990_v0 = vmul.f32 %v2987_v55, %v2935_v58  ;;  %v2937_v1 = vpop.f32.mrb[10].mxu0 }
 0x3d5   :  { %v2998_v2 = vadd.f32 %v2996_v62, %v2989_v57  ;;  %v2938_v3 = vpop.f32.mrb[11].mxu0  ;;  %v2974_v5 = vpop.f32.mrb[8].mxu1 }
 0x3d6   :  { %v2999_v8 = vadd.f32 %v2996_v62, %v2990_v0  ;;  %v2991_v9 = vmul.f32 %v2987_v55, %v2974_v5  ;;  %v4373_v10 = vpop.f32.mrb[9].mxu1 }
 0x3d7   :  { %v3001_v11 = vmax.f32 %v2998_v2, 0.0  ;;  %v2977_v61 = vpop.f32.mrb[10].mxu1 }
 0x3d8   :  { %v3002_v12 = vmax.f32 %v2999_v8, 0.0  ;;  %v3000_v13 = vadd.f32 %v2996_v62, %v2991_v9  ;;  %v4374_v60 = vpop.f32.mrb[11].mxu1  ;;  %v4113_v62 = vld [vmem:[%s5646_s4 + $0x4] sm:$0x3]  ;;  %v4117_v8 = vld [vmem:[%s5646_s4 + $0x6] sm:$0x3] }
 0x3d9   :  { %v3004_v14 = vmul.f32 %v3001_v11, %v5004_v43  ;;  %v2002_v43 = vld [vmem:[%s5647_s5] sm:$0xf] }
 0x3da   :  { %v3005_v63 = vmul.f32 %v3002_v12, %v5006_v47  ;;  %v3003_v15 = vmax.f32 %v3000_v13, 0.0  ;;  %v3952_v47 = vld [vmem:[%s5647_s5] sm:$0xf] }
 0x3db   :  { %v5415_v16 = vpack.c.bf16 %v3004_v14, %v3004_v14 }
 0x3dc   :  { %v5417_v17 = vpack.c.bf16 %v3005_v63, %v3005_v63  ;;  %v3006_v18 = vmul.f32 %v3003_v15, %v5008_v50  ;;  %v2011_v50 = vld [vmem:[%s5648_s6] sm:$0xf]  ;;  %v4121_v63 = vld [vmem:[%s5646_s4 + $0x8] sm:$0x3] }
 0x3dd   :  { %3025 = vrot.lane.b32.xlu1 %v5415_v16, %s4731_s9  ;;  %v3436_v10 = vsel %vm75_vm2, %v5415_v16, 0 }
 0x3de   :  { %v5422_v19 = vpack.c.bf16 %v3006_v18, %v3006_v18  ;;  %3027 = vrot.lane.b32.xlu0 %v5417_v17, %s4731_s9 }
 0x3e0   :  { %v3442_v12 = vsel %vm75_vm2, %v5422_v19, 0 }
 0x3e1   :  { %3029 = vrot.lane.b32.xlu1 %v5422_v19, %s4731_s9 }
 0x3e2   :  { %3014 = vrot.lane.b32.xlu0 %v5415_v16, %s4735_s10 }
 0x3e5   :  { %3016 = vrot.lane.b32.xlu1 %v5417_v17, %s4735_s10 }
 0x3e6   :  { %3018 = vrot.lane.b32.xlu0 %v5422_v19, %s4735_s10 }
 0x3e9   :  { %3220 = vrot.lane.b32.xlu1 %v5415_v16, %s4736_s11 }
 0x3ea   :  { %3222 = vrot.lane.b32.xlu0 %v5417_v17, %s4736_s11 }
 0x3ed   :  { %3224 = vrot.lane.b32.xlu1 %v5422_v19, %s4736_s11 }
 0x3ee   :  { %3326 = vrot.lane.b32.xlu0 %v5415_v16, %s4737_s12 }
 0x3f1   :  { %3328 = vrot.lane.b32.xlu1 %v5417_v17, %s4737_s12 }
 0x3f2   :  { %3330 = vrot.lane.b32.xlu0 %v5422_v19, %s4737_s12 }
 0x3f5   :  { %3529 = vrot.lane.b32.xlu1 %v5415_v16, %s4738_s13 }
 0x3f6   :  { %3531 = vrot.lane.b32.xlu0 %v5417_v17, %s4738_s13 }
 0x3f9   :  { %3533 = vrot.lane.b32.xlu1 %v5422_v19, %s4738_s13 }
 0x3fa   :  { %3635 = vrot.lane.b32.xlu0 %v5415_v16, %s4739_s14 }
 0x3fd   :  { %3637 = vrot.lane.b32.xlu1 %v5417_v17, %s4739_s14 }
 0x3fe   :  { %3639 = vrot.lane.b32.xlu0 %v5422_v19, %s4739_s14 }
 0x401   :  { %3741 = vrot.lane.b32.xlu1 %v5415_v16, %s4740_s15 }
 0x402   :  { %3743 = vrot.lane.b32.xlu0 %v5417_v17, %s4740_s15 }
 0x405   :  { %3745 = vrot.lane.b32.xlu1 %v5422_v19, %s4740_s15 }
 0x406   :  { %3847 = vrot.lane.b32.xlu0 %v5415_v16, %s4741_s16 }
 0x409   :  { %3849 = vrot.lane.b32.xlu1 %v5417_v17, %s4741_s16 }
 0x40a   :  { %3851 = vrot.lane.b32.xlu0 %v5422_v19, %s4741_s16 }
 0x40d   :  { %2005 = vperm.xlu1 %4700, %v2002_v43  }
 0x40e   :  { %3955 = vperm.xlu0 %4699, %v3952_v47  }
 0x411   :  { %2014 = vperm.xlu1 %4700, %v2011_v50  }
 0x412   :  { %3964 = vperm.xlu0 %4699, %v3961_v20  }
 0x44f   :  { %v3026_v21 = vpop.permute.xlu1 %3025 }
 0x450   :  { %v3034_v22 = vsel %vm65_vm1, 0, %v3026_v21  ;;  %v3028_v23 = vpop.permute.xlu0 %3027 }
 0x451   :  { %v3038_v24 = vsel %vm75_vm2, %v3034_v22, 0  ;;  %v3031_v25 = vsel %vm65_vm1, %v3026_v21, %v3028_v23 }
 0x452   :  { %4107 = vmatprep.subr.msk.bf16.mxu0 %vm75_vm2, %v3031_v25 }
 0x453   :  { %v3030_v26 = vpop.permute.xlu1 %3029  ;;  %3047 = vmatpush1.bf16.msra.mxu0 %v3038_v24 }
 0x454   :  { %v3032_v28 = vsel %vm65_vm1, %v3028_v23, %v3030_v26  ;;  %v3015_v29 = vpop.permute.xlu0 %3014  ;;  %v4125_v23 = vld [vmem:[%s5646_s4 + $0xa] sm:$0x3] }
 0x455   :  { %v3044_v30 = vsel %vm75_vm2, %v3032_v28, 0  ;;  %v3023_v31 = vsel %vm50_vm3, 0, %v3015_v29 }
 0x456   :  { %4108 = vmatmul.mubr.msk.bf16.vlgmr.msra.gmra.mrb[12].mxu0 %vm71_vm4, %v4106_v27  ;;  %4376 = vmatpush3.bf16.msra.mxu1 %v3044_v30  ;;  %v3130_v35 = vsel %vm75_vm2, %v3023_v31, 0 }
 0x457   :  { %v3017_v32 = vpop.permute.xlu1 %3016  ;;  %4381 = vmatprep.subr.bf16.mxu1 %v4732_v6  ;;  %3170 = vmatprep.mubr.bf16.mxu0 %v4733_v7 }
 0x458   :  { %v3020_v33 = vsel %vm50_vm3, %v3015_v29, %v3017_v32  ;;  %v3019_v34 = vpop.permute.xlu0 %3018 }
 0x459   :  { %v3021_v36 = vsel %vm50_vm3, %v3017_v32, %v3019_v34  ;;  %4378 = vmatmul.mubr.msk.bf16.vlgmr.msra.gmra.mrb[12].mxu1 %vm71_vm4, %v4106_v27  ;;  %4110 = vmatprep.subr.msk.bf16.mxu0 %vm75_vm2, %v3020_v33  ;;  %v4704_v32 = vld [vmem:[%s5642_s0 + $0x8] sm:$0xf] }
 0x45a   :  { %v3136_v37 = vsel %vm75_vm2, %v3021_v36, 0  ;;  %3139 = vmatpush1.bf16.msra.mxu0 %v3130_v35  ;;  %4383 = vmatprep.mubr.msk.bf16.mxu1 %vm4734_vm0, %v4732_v6 }
 0x45b   :  { %v3221_v38 = vpop.permute.xlu1 %3220  ;;  %4382 = vmatpush3.bf16.msra.mxu1 %v3136_v37 }
 0x45c   :  { %v3223_v39 = vpop.permute.xlu0 %3222  ;;  %4387 = vmatprep.subr.bf16.mxu1 %v4732_v6  ;;  %v3229_v41 = vsel %vm265_vm5, 0, %v3221_v38 }
 0x45d   :  { %v3226_v40 = vsel %vm265_vm5, %v3221_v38, %v3223_v39  ;;  %v3233_v48 = vsel %vm75_vm2, %v3229_v41, 0 }
 0x45e   :  { %4114 = vmatprep.subr.msk.bf16.mxu0 %vm75_vm2, %v3226_v40  ;;  %v4129_v40 = vld [vmem:[%s5646_s4 + $0xc] sm:$0x3] }
 0x45f   :  { %v3225_v42 = vpop.permute.xlu1 %3224 }
 0x460   :  { %v3227_v49 = vsel %vm265_vm5, %v3223_v39, %v3225_v42  ;;  %v3327_v52 = vpop.permute.xlu0 %3326 }
 0x461   :  { %v3239_v55 = vsel %vm75_vm2, %v3227_v49, 0  ;;  %v3335_v57 = vsel %vm374_vm6, 0, %v3327_v52 }
 0x462   :  { %4111 = vmatmul.mubr.msk.bf16.vlgmr.msra.gmra.mrb[12].mxu0 %vm71_vm4, %v3010_v44  ;;  %v3339_v0 = vsel %vm75_vm2, %v3335_v57, 0  ;;  %v4137_v57 = vld [vmem:[%s5646_s4 + $0x10] sm:$0x3] }
 0x463   :  { %3242 = vmatpush1.bf16.msra.mxu0 %v3233_v48  ;;  %v3329_v53 = vpop.permute.xlu1 %3328  ;;  %3273 = vmatprep.mubr.bf16.mxu0 %v4733_v7 }
 0x464   :  { %v3332_v54 = vsel %vm374_vm6, %v3327_v52, %v3329_v53  ;;  %v3331_v58 = vpop.permute.xlu0 %3330 }
 0x465   :  { %4384 = vmatmul.mubr.msk.bf16.vlgmr.msra.gmra.mrb[12].mxu1 %vm71_vm4, %v3010_v44  ;;  %4118 = vmatprep.subr.msk.bf16.mxu0 %vm75_vm2, %v3332_v54  ;;  %v3333_v1 = vsel %vm374_vm6, %v3329_v53, %v3331_v58  ;;  %v4133_v53 = vld [vmem:[%s5646_s4 + $0xe] sm:$0x3]  ;;  %s4742_s4 = smov [#allocation2]  }
 0x466   :  { %4388 = vmatpush3.bf16.msra.mxu1 %v3239_v55  ;;  %4389 = vmatprep.mubr.msk.bf16.mxu1 %vm4734_vm0, %v4732_v6  ;;  %v3345_v3 = vsel %vm75_vm2, %v3333_v1, 0  ;;  %s3988_s12 = sshll.u32 %s4742_s4, 4  ;;  %s3989_s12 = int_to_ptr.vmem [resolvable:$true] %s3988_s12 }
 0x467   :  { %4393 = vmatprep.subr.bf16.mxu1 %v4732_v6  ;;  %v3530_v56 = vpop.permute.xlu1 %3529  ;;  %s4707_s15 = scalar_lea.vmem %s3989_s12, 384  ;;  %p4712_p1 = scmp.lt.s32.totalorder %s3989_s12, %s3989_s12 }
 0x468   :  { %v3532_v9 = vpop.permute.xlu0 %3531  ;;  %p4708_p0 = scmp.ne.s32.totalorder %s3989_s12, %s4707_s15  ;;  %p4713_p2 = scmp.lt.s32.totalorder %s4707_s15, %s4707_s15 }
 0x469   :  { %v3535_v14 = vsel %vm581_vm7, %v3530_v56, %v3532_v9 }
 0x46a   :  { %v3543_v16 = vsel %vm75_vm2, %v3535_v14, 0  ;;  %p4714_p3 = por %p4713_p2, %p4712_p1 }
 0x46b   :  { %v3534_v2 = vpop.permute.xlu1 %3533 }
 0x46c   :  { %v3536_v11 = vsel %vm581_vm7, %v3532_v9, %v3534_v2  ;;  %v3636_v13 = vpop.permute.xlu0 %3635  ;;  %p4715_p4 = pnand %p4714_p3, %p4708_p0 }
 0x46e   :  { %4115 = vmatmul.mubr.msk.bf16.vlgmr.msra.gmra.mrb[12].mxu0 %vm71_vm4, %v4113_v62 }
 0x46f   :  { %3348 = vmatpush1.bf16.msra.mxu0 %v3339_v0  ;;  %3379 = vmatprep.mubr.bf16.mxu0 %v4733_v7  ;;  %v3638_v5 = vpop.permute.xlu1 %3637 }
 0x470   :  { %4122 = vmatprep.subr.msk.bf16.mxu0 %vm75_vm2, %v5417_v17  ;;  %v3640_v15 = vpop.permute.xlu0 %3639  ;;  %v3538_v17 = vsel %vm581_vm7, %v3534_v2, 0  ;;  %v3641_v50 = vsel %vm690_vm8, %v3636_v13, %v3638_v5 }
 0x471   :  { %4390 = vmatmul.mubr.msk.bf16.vlgmr.msra.gmra.mrb[12].mxu1 %vm71_vm4, %v4113_v62  ;;  %v3642_v18 = vsel %vm690_vm8, %v3638_v5, %v3640_v15  ;;  %v3548_v43 = vsel %vm75_vm2, %v3538_v17, 0  ;;  %v3649_v29 = vsel %vm75_vm2, %v3641_v50, 0  ;;  %v3644_v30 = vsel %vm690_vm8, %v3640_v15, 0  ;;  %v4706_v17 = vld [vmem:[%s5642_s0 + $0x14] sm:$0xf] }
 0x472   :  { %4394 = vmatpush3.bf16.msra.mxu1 %v3345_v3  ;;  %4395 = vmatprep.mubr.msk.bf16.mxu1 %vm4734_vm0, %v4732_v6  ;;  %v3654_v34 = vsel %vm75_vm2, %v3644_v30, 0 }
 0x473   :  { %4399 = vmatprep.subr.bf16.mxu1 %v4732_v6  ;;  %v3742_v61 = vpop.permute.xlu1 %3741 }
 0x474   :  { %v3744_v24 = vpop.permute.xlu0 %3743 }
 0x475   :  { %v3747_v39 = vsel %vm799_vm9, %v3742_v61, %v3744_v24  ;;  %v4705_v61 = vld [vmem:[%s5642_s0 + $0xc] sm:$0xff] }
 0x476   :  { %v3755_v42 = vsel %vm75_vm2, %v3747_v39, 0 }
 0x477   :  { %v3746_v60 = vpop.permute.xlu1 %3745 }
 0x478   :  { %v3748_v31 = vsel %vm799_vm9, %v3744_v24, %v3746_v60  ;;  %v3848_v38 = vpop.permute.xlu0 %3847  ;;  %v3750_v44 = vsel %vm799_vm9, %v3746_v60, 0 }
 0x479   :  { %v3760_v49 = vsel %vm75_vm2, %v3750_v44, 0 }
 0x47a   :  { %4119 = vmatmul.mubr.msk.bf16.vlgmr.msra.gmra.mrb[12].mxu0 %vm71_vm4, %v4117_v8 }
 0x47b   :  { %3445 = vmatpush1.bf16.msra.mxu0 %v3436_v10  ;;  %3476 = vmatprep.mubr.bf16.mxu0 %v4733_v7  ;;  %v3850_v19 = vpop.permute.xlu1 %3849 }
 0x47c   :  { %4126 = vmatprep.subr.msk.bf16.mxu0 %vm75_vm2, %v3536_v11  ;;  %v3852_v41 = vpop.permute.xlu0 %3851  ;;  %v3853_v52 = vsel %vm908_vm10, %v3848_v38, %v3850_v19 }
 0x47d   :  { %4396 = vmatmul.mubr.msk.bf16.vlgmr.msra.gmra.mrb[12].mxu1 %vm71_vm4, %v4117_v8  ;;  %v3854_v48 = vsel %vm908_vm10, %v3850_v19, %v3852_v41  ;;  %v3861_v54 = vsel %vm75_vm2, %v3853_v52, 0  ;;  %v3856_v55 = vsel %vm908_vm10, %v3852_v41, 0 }
 0x47e   :  { %4400 = vmatpush3.bf16.msra.mxu1 %v3442_v12  ;;  %4401 = vmatprep.mubr.msk.bf16.mxu1 %vm4734_vm0, %v4732_v6  ;;  %v3866_v56 = vsel %vm75_vm2, %v3856_v55, 0 }
 0x47f   :  { %4405 = vmatprep.subr.bf16.mxu1 %v4732_v6 }
 0x486   :  { %4123 = vmatmul.mubr.msk.bf16.vlgmr.msra.gmra.mrb[12].mxu0 %vm71_vm4, %v4121_v63 }
 0x487   :  { %3551 = vmatpush1.bf16.msra.mxu0 %v3543_v16  ;;  %3582 = vmatprep.mubr.bf16.mxu0 %v4733_v7 }
 0x488   :  { %4130 = vmatprep.subr.msk.bf16.mxu0 %vm75_vm2, %v3642_v18 }
 0x489   :  { %4402 = vmatmul.mubr.msk.bf16.vlgmr.msra.gmra.mrb[12].mxu1 %vm71_vm4, %v4121_v63 }
 0x48a   :  { %4406 = vmatpush3.bf16.msra.mxu1 %v3548_v43  ;;  %4407 = vmatprep.mubr.msk.bf16.mxu1 %vm4734_vm0, %v4732_v6 }
 0x48b   :  { %4411 = vmatprep.subr.bf16.mxu1 %v4732_v6 }
 0x48c   :  { %v2006_v47 = vpop.permute.xlu1 %2005 }
 0x48d   :  { %v2008_v20 = vmul.f32 %v2006_v47, %v5407_v45  ;;  %v2009_v21 = vmul.f32 %v2006_v47, %v5409_v46  ;;  %v2010_v22 = vmul.f32 %v2006_v47, %v5411_v51  ;;  %v4703_v45 = vld [vmem:[%s5642_s0] sm:$0xff]  ;;  %v3956_v58 = vpop.permute.xlu0 %3955 }
 0x490   :  { %v2015_v25 = vpop.permute.xlu1 %2014 }
 0x491   :  { %v2017_v26 = vadd.f32 %v2015_v25, %v2008_v20  ;;  %v2018_v27 = vadd.f32 %v2015_v25, %v2009_v21  ;;  %v2019_v28 = vadd.f32 %v2015_v25, %v2010_v22  ;;  %v3965_v1 = vpop.permute.xlu0 %3964 }
 0x492   :  { %4127 = vmatmul.mubr.msk.bf16.vlgmr.msra.gmra.mrb[12].mxu0 %vm71_vm4, %v4125_v23 }
 0x493   :  { %v2020_v46 = vadd.f32 %v4703_v45, %v2017_v26  ;;  %v2021_v51 = vadd.f32 %v2018_v27, %v4800_v4  ;;  %v2022_v33 = vadd.f32 %v4704_v32, %v2019_v28  ;;  %3657 = vmatpush1.bf16.msra.mxu0 %v3649_v29  ;;  %3688 = vmatprep.mubr.bf16.mxu0 %v4733_v7 }
 0x494   :  { %4134 = vmatprep.subr.msk.bf16.mxu0 %vm75_vm2, %v3748_v31 }
 0x495   :  { %v2023_v35 = vmax.f32 %v2020_v46, 0.0  ;;  %v2024_v36 = vmax.f32 %v2021_v51, 0.0  ;;  %v2025_v37 = vmax.f32 %v2022_v33, 0.0  ;;  %4408 = vmatmul.mubr.msk.bf16.vlgmr.msra.gmra.mrb[12].mxu1 %vm71_vm4, %v4125_v23 }
 0x496   :  { %4412 = vmatpush3.bf16.msra.mxu1 %v3654_v34  ;;  %4413 = vmatprep.mubr.msk.bf16.mxu1 %vm4734_vm0, %v4732_v6 }
 0x497   :  { %v2028_v4 = vcombine.low %v2023_v35, %v2024_v36  ;;  %2031 = vst [vmem:[#allocation2 + $0x8] sm:$0xf] %v2025_v37  ;;  %4417 = vmatprep.subr.bf16.mxu1 %v4732_v6 }
 0x499   :  { %2030 = vst [vmem:[#allocation2] sm:$0xff] %v2028_v4 }
 0x49e   :  { %4131 = vmatmul.mubr.msk.bf16.vlgmr.msra.gmra.mrb[12].mxu0 %vm71_vm4, %v4129_v40 }
 0x49f   :  { %3763 = vmatpush1.bf16.msra.mxu0 %v3755_v42  ;;  %3794 = vmatprep.mubr.bf16.mxu0 %v4733_v7 }
 0x4a0   :  { %4138 = vmatprep.subr.msk.bf16.mxu0 %vm75_vm2, %v3854_v48 }
 0x4a1   :  { %4414 = vmatmul.mubr.msk.bf16.vlgmr.msra.gmra.mrb[12].mxu1 %vm71_vm4, %v4129_v40 }
 0x4a2   :  { %4418 = vmatpush3.bf16.msra.mxu1 %v3760_v49  ;;  %4419 = vmatprep.mubr.msk.bf16.mxu1 %vm4734_vm0, %v4732_v6 }
 0x4a3   :  { %4423 = vmatprep.subr.bf16.mxu1 %v4732_v6 }
 0x4aa   :  { %4135 = vmatmul.mubr.msk.bf16.vlgmr.msra.gmra.mrb[12].mxu0 %vm71_vm4, %v4133_v53 }
 0x4ab   :  { %3869 = vmatpush1.bf16.msra.mxu0 %v3861_v54  ;;  %3900 = vmatprep.mubr.bf16.mxu0 %v4733_v7 }
 0x4ad   :  { %4420 = vmatmul.mubr.msk.bf16.vlgmr.msra.gmra.mrb[12].mxu1 %vm71_vm4, %v4133_v53 }
 0x4ae   :  { %4424 = vmatpush3.bf16.msra.mxu1 %v3866_v56  ;;  %4425 = vmatprep.mubr.msk.bf16.mxu1 %vm4734_vm0, %v4732_v6 }
 0x4b6   :  { %4139 = vmatmul.mubr.msk.bf16.vlgmr.msra.gmra.mrb[12].mxu0 %vm71_vm4, %v4137_v57 }
 0x4b9   :  { %4426 = vmatmul.mubr.msk.bf16.vlgmr.msra.gmra.mrb[12].mxu1 %vm71_vm4, %v4137_v57 }
 0x589   :  { %v3902_v62 = vpop.f32.mrb[12].mxu0 }
 0x58a   :  { %v3958_v0 = vmul.f32 %v3956_v58, %v3902_v62  ;;  %v3904_v7 = vpop.f32.mrb[13].mxu0 }
 0x58b   :  { %v3959_v2 = vmul.f32 %v3956_v58, %v3904_v7  ;;  %v3906_v3 = vpop.f32.mrb[14].mxu0 }
 0x58c   :  { %v3967_v5 = vadd.f32 %v3965_v1, %v3958_v0  ;;  %v3907_v8 = vpop.f32.mrb[15].mxu0  ;;  %v3943_v9 = vpop.f32.mrb[12].mxu1 }
 0x58d   :  { %v3968_v10 = vadd.f32 %v3965_v1, %v3959_v2  ;;  %v3960_v6 = vmul.f32 %v3956_v58, %v3943_v9  ;;  %v4427_v11 = vpop.f32.mrb[13].mxu1 }
 0x58e   :  { %v3970_v12 = vadd.f32 %v4705_v61, %v3967_v5  ;;  %v3946_v13 = vpop.f32.mrb[14].mxu1 }
 0x58f   :  { %v3971_v60 = vadd.f32 %v3968_v10, %v5066_v59  ;;  %v3969_v14 = vadd.f32 %v3965_v1, %v3960_v6  ;;  %v4428_v63 = vpop.f32.mrb[15].mxu1 }
 0x590   :  { %v3973_v15 = vmax.f32 %v3970_v12, 0.0 }
 0x591   :  { %v3974_v16 = vmax.f32 %v3971_v60, 0.0  ;;  %v3972_v18 = vadd.f32 %v4706_v17, %v3969_v14 }
 0x593   :  { %v3978_v19 = vcombine.low %v3973_v15, %v3974_v16  ;;  %v3975_v43 = vmax.f32 %v3972_v18, 0.0 }
 0x595   :  { %3981 = vst [vmem:[#allocation2 + $0xc] sm:$0xff] %v3978_v19  ;;  %3982 = vst [vmem:[#allocation2 + $0x14] sm:$0xf] %v3975_v43 }
 0x596   :  { %4718 = shalt.err (!%p4715_p4)
}
 0x597   :  { %s4719_s6 = scalar_lea.hbm %s5650_s8, 384 }
 0x598   :  { %p4720_p5 = scmp.ne.s32.totalorder %s5650_s8, %s4719_s6  ;;  %p4723_p6 = scmp.lt.u32.totalorder %s4719_s6, %s5650_s8 }
 0x59a   :  { %p4725_p7 = pnand %p4723_p6, %p4720_p5 }
 0x59c   :  { %4728 = shalt.err (!%p4725_p7)
}
 0x59d   :  { %s4743_s23 = smov 192   ;;  %s4744_s24 = smov 12  }
 0x59e   :  { %3994 = dma.vmem_to_hbm [thread:$0]  %s3989_s12, 384, %s5650_s8, [#allocation3], %s4743_s23, %s4743_s23, %s4744_s24  }
 0x59f   :  { %4729 = dma.done.wait [#allocation3], 384  }
 0x5a0   :  { %4730 = vsyncadd [#allocation3], 4294966912 }
 0x5a1   :  { %3998 = vsyncpa [#allocation3], 1 }

</bundles_post_ra>
